<compile_context>
chip_gen: v7x
topology: tpu7x:2x2x1
jax: 0.10.0
libtpu: 0.0.40
codegen_flags: <defaults>
</compile_context>

<pallas_src>
import jax
import jax.numpy as jnp
from jax.experimental import pallas as pl
from jax.experimental.pallas import tpu as pltpu


# ----------------------- banded pair-form weight builders -----------------------
# A (2R, Wmap, C) map is stored as (R, 2*Wmap*C): row i = [row 2i | row 2i+1],
# each flattened as (width, channel).  The builders fold kernel taps, width-edge
# zero padding and (for the deconv) the sub-pixel phase decomposition into the
# three banded matrices BW[-1], BW[0], BW[+1].  Built once per call (tiny).

def _conv3x3_pair_weights(w, wmap):
    """w: (Cout, Cin, 3, 3) -> (3, 2*wmap*Cin, 2*wmap*Cout)."""
    cout, cin, kh, kw = w.shape
    assert kh == 3 and kw == 3

    def width_block(dy):
        blk = jnp.zeros((wmap, cin, wmap, cout), w.dtype)
        for dx in range(3):
            sel = jnp.eye(wmap, k=-(dx - 1), dtype=w.dtype)   # sel[p,q]=1 iff p=q+dx-1
            blk = blk + jnp.einsum('pq,oc->pcqo', sel, w[:, :, dy, dx])
        return blk.reshape(wmap * cin, wmap * cout)

    # (out-row-phase r, in-row-phase r', kernel-row dy) grouped by pair shift D.
    taps = {-1: [(0, 1, 0)],
            0: [(0, 0, 1), (0, 1, 2), (1, 0, 0), (1, 1, 1)],
            1: [(1, 0, 2)]}
    mats = []
    for D in (-1, 0, 1):
        m = jnp.zeros((2, wmap * cin, 2, wmap * cout), w.dtype)
        for r, rp, dy in taps[D]:
            m = m.at[rp, :, r, :].add(width_block(dy))
        mats.append(m.reshape(2 * wmap * cin, 2 * wmap * cout))
    return jnp.stack(mats, axis=0)


def _deconv4x4_s2_pair_weights(w, win):
    """w: (Cin, Cout, 4, 4) (PyTorch ConvTranspose2d) -> (3, win*Cin, 2*2*win*Cout)."""
    cin, cout, kh, kw = w.shape
    assert kh == 4 and kw == 4
    # Sub-pixel taps of the k=4 / stride=2 / pad=1 deconv: kh = r+1-2d, kw = s+1-2e.
    row_taps = {(-1, 0): 3, (0, 0): 1, (0, 1): 2, (1, 1): 0}   # (d, r) -> kh
    col_taps = {(-1, 0): 3, (0, 0): 1, (0, 1): 2, (1, 1): 0}   # (e, s) -> kw
    mats = []
    for d in (-1, 0, 1):
        m = jnp.zeros((win, cin, 2, win, 2, cout), w.dtype)
        for (dd, r), k_h in row_taps.items():
            if dd != d:
                continue
            for (e, s), k_w in col_taps.items():
                sel = jnp.eye(win, k=-e, dtype=w.dtype)        # sel[p,j]=1 iff p=j+e
                m = m.at[:, :, r, :, s, :].add(
                    jnp.einsum('pj,co->pcjo', sel, w[:, :, k_h, k_w]))
        mats.append(m.reshape(win * cin, 2 * 2 * win * cout))
    return jnp.stack(mats, axis=0)


# --------------------------------- fused kernel ---------------------------------

_HALO_OFF = 8   # interior rows start sublane-aligned inside the halo scratch


def _make_fused_kernel(n_skips, rows):
    """deconv -> (fused concat) conv1+ReLU -> conv2+ReLU, one batch element per step."""

    def kernel(*refs):
        n_in = 7 + 2 * n_skips
        x0_ref = refs[0]
        skip_refs = refs[1:1 + n_skips]
        wup_ref = refs[1 + n_skips]
        w1_refs = refs[2 + n_skips:3 + 2 * n_skips]
        w2_ref = refs[3 + 2 * n_skips]
        bup_ref = refs[4 + 2 * n_skips]
        b1_ref = refs[5 + 2 * n_skips]
        b2_ref = refs[6 + 2 * n_skips]
        out_ref = refs[n_in]
        halo = refs[n_in + 1]

        R, OFF = rows, _HALO_OFF
        kmax = halo.shape[1]
        # Zero the two halo rows (just above / below the interior) once per step;
        # this is the in-kernel replacement for padding whole tensors in HBM.
        halo[OFF - 1:OFF, :] = jnp.zeros((1, kmax), halo.dtype)
        halo[OFF + R:OFF + R + 1, :] = jnp.zeros((1, kmax), halo.dtype)

        def banded(u, w_ref):
            # sum_d shift_rows(u, d) @ w_ref[d+1], f32 accumulation on the MXU.
            K = u.shape[1]
            halo[OFF:OFF + R, :K] = u.astype(halo.dtype)
            acc = None
            for d in (-1, 0, 1):
                t = jnp.dot(halo[OFF + d:OFF + d + R, :K], w_ref[d + 1],
                            preferred_element_type=jnp.float32)
                acc = t if acc is None else acc + t
            return acc

        # ConvTranspose2d(4, stride=2, pad=1) in sub-pixel form (no zero-stuffing).
        up = banded(x0_ref[0], wup_ref) + bup_ref[...]
        # conv1: K-split over [up channels] + [each skip's channels] fuses the concat.
        h1 = banded(up, w1_refs[0])
        for s_ref, w_ref in zip(skip_refs, w1_refs[1:]):
            h1 = h1 + banded(s_ref[0], w_ref)
        h1 = jnp.maximum(h1 + b1_ref[...], 0.0)
        # conv2 + ReLU, lane-dense store (N is a multiple of 128 here).
        h2 = jnp.maximum(banded(h1, w2_ref) + b2_ref[...], 0.0)
        out_ref[0] = h2.astype(out_ref.dtype)

    return kernel


# ------------------------------- module forward --------------------------------

def unet_up_origin_forward(params, inputs0_nchw, *skips_nchw):
    """unetUp_origin.forward: up(inputs0) -> cat(skips) -> conv1+ReLU -> conv2+ReLU."""
    up_w, up_b = params['up_w'], params['up_b']
    w1, b1 = params['conv1_w'], params['conv1_b']
    w2, b2 = params['conv2_w'], params['conv2_b']

    B, cin, H, W = inputs0_nchw.shape
    cin_w, cout, _, _ = up_w.shape
    assert cin_w == cin
    Ho, Wo = 2 * H, 2 * W
    N = 2 * Wo * cout                       # pair-row width of out_size-channel maps

    # Boundary layout plumbing: one NCHW->NHWC transpose per input + free reshapes.
    # TODO(synk): accept/produce NHWC at the module boundary in production.
    x0_rows = jnp.transpose(inputs0_nchw, (0, 2, 3, 1)).reshape(B, H, W * cin)
    skip_rows, skip_ch = [], []
    for s in skips_nchw:
        cs = s.shape[1]
        assert s.shape == (B, cs, Ho, Wo)
        skip_rows.append(jnp.transpose(s, (0, 2, 3, 1)).reshape(B, H, 2 * Wo * cs))
        skip_ch.append(cs)

    # Parameter preprocessing (tiny; depends only on weights -- cache in production).
    wup_m = _deconv4x4_s2_pair_weights(up_w, W)                 # (3, W*cin, N)
    seg_ch = [cout] + skip_ch
    assert sum(seg_ch) == w1.shape[1]
    w1_m, off = [], 0
    for c in seg_ch:                                            # K-split of conv1
        w1_m.append(_conv3x3_pair_weights(w1[:, off:off + c], Wo))
        off += c
    w2_m = _conv3x3_pair_weights(w2, Wo)                        # (3, N, N)
    bup_row = jnp.tile(up_b, 2 * Wo).reshape(1, N)
    b1_row = jnp.tile(b1, 2 * Wo).reshape(1, N)
    b2_row = jnp.tile(b2, 2 * Wo).reshape(1, N)

    args = [x0_rows, *skip_rows, wup_m, *w1_m, w2_m, bup_row, b1_row, b2_row]
    in_specs = (
        [pl.BlockSpec((1, H, W * cin), lambda b: (b, 0, 0))]
        + [pl.BlockSpec((1, H, sr.shape[2]), lambda b: (b, 0, 0)) for sr in skip_rows]
        + [pl.BlockSpec(wup_m.shape, lambda b: (0, 0, 0))]
        + [pl.BlockSpec(m.shape, lambda b: (0, 0, 0)) for m in w1_m]
        + [pl.BlockSpec(w2_m.shape, lambda b: (0, 0, 0))]
        + [pl.BlockSpec((1, N), lambda b: (0, 0)) for _ in range(3)]
    )
    kmax = max([W * cin] + [sr.shape[2] for sr in skip_rows] + [N])

    out_rows = pl.pallas_call(
        _make_fused_kernel(len(skips_nchw), H),
        out_shape=jax.ShapeDtypeStruct((B, H, N), jnp.float32),
        grid_spec=pltpu.PrefetchScalarGridSpec(
            num_scalar_prefetch=0,
            grid=(B,),
            in_specs=in_specs,
            out_specs=pl.BlockSpec((1, H, N), lambda b: (b, 0, 0)),
            scratch_shapes=[pltpu.VMEM((_HALO_OFF + H + 1, kmax), jnp.float32)],
        ),
        compiler_params=pltpu.CompilerParams(
            dimension_semantics=("parallel",)),
    )(*args)

    # Contiguous (free) un-pairing, then NCHW at the PyTorch boundary.
    return jnp.transpose(out_rows.reshape(B, Ho, Wo, cout), (0, 3, 1, 2))


# -------------------------- pure-JAX reference (check) --------------------------

def _conv_transpose2d_ref(x, w, b, *, stride, pad):
    """Direct scatter-add definition of ConvTranspose2d (independent of the kernel)."""
    B, cin, H, W = x.shape
    _, cout, kh, kw = w.shape
    Ho = (H - 1) * stride - 2 * pad + kh
    Wo = (W - 1) * stride - 2 * pad + kw
    buf = jnp.zeros((B, cout, (H - 1) * stride + kh, (W - 1) * stride + kw), x.dtype)
    for i in range(kh):
        for j in range(kw):
            contrib = jnp.einsum('bihw,io->bohw', x, w[:, :, i, j])
            buf = buf.at[:, :, i:i + stride * H:stride, j:j + stride * W:stride].add(contrib)
    out = buf[:, :, pad:pad + Ho, pad:pad + Wo]
    return out + b.reshape(1, -1, 1, 1)


def ref_forward(params, inputs0, *skips):
    dn = ('NCHW', 'OIHW', 'NCHW')
    x = _conv_transpose2d_ref(inputs0, params['up_w'], params['up_b'], stride=2, pad=1)
    for s in skips:
        x = jnp.concatenate([x, s], axis=1)
    for wk, bk in (('conv1_w', 'conv1_b'), ('conv2_w', 'conv2_b')):
        x = jax.lax.conv_general_dilated(x, params[wk], (1, 1), [(1, 1), (1, 1)],
                                         dimension_numbers=dn)
        x = jnp.maximum(x + params[bk].reshape(1, -1, 1, 1), 0.0)
    return x


# ------------------------------------ main ------------------------------------

def _kaiming(key, shape, fan_in):
    return ((2.0 / fan_in) ** 0.5) * jax.random.normal(key, shape, jnp.float32)


if __name__ == "__main__":
    # unetUp_origin(in_size=8, out_size=4, is_deconv=True, n_concat=2)
    B, in_size, out_size, H, W = 2, 8, 4, 8, 8
    ks = jax.random.split(jax.random.PRNGKey(0), 8)
    params = {
        # nn.ConvTranspose2d(in_size, out_size, 4, 2, 1): weight (Cin, Cout, 4, 4)
        'up_w':    _kaiming(ks[0], (in_size, out_size, 4, 4), in_size * 16),
        'up_b':    0.01 * jax.random.normal(ks[1], (out_size,), jnp.float32),
        # unetConv2: two Conv2d(., out_size, 3, 1, 1) + ReLU (no batchnorm)
        'conv1_w': _kaiming(ks[2], (out_size, in_size, 3, 3), in_size * 9),
        'conv1_b': 0.01 * jax.random.normal(ks[3], (out_size,), jnp.float32),
        'conv2_w': _kaiming(ks[4], (out_size, out_size, 3, 3), out_size * 9),
        'conv2_b': 0.01 * jax.random.normal(ks[5], (out_size,), jnp.float32),
    }
    inputs0 = jax.random.normal(ks[6], (B, in_size, H, W), jnp.float32)        # low-res feature
    skip1 = jax.random.normal(ks[7], (B, out_size, 2 * H, 2 * W), jnp.float32) # skip connection

    fwd = jax.jit(unet_up_origin_forward)
    out = jax.block_until_ready(fwd(params, inputs0, skip1))
    assert out.shape == (B, out_size, 2 * H, 2 * W), out.shape

    ref = jax.block_until_ready(ref_forward(params, inputs0, skip1))
    if not bool(jnp.allclose(out, ref, rtol=1e-4, atol=1e-4)):
        err = float(jnp.max(jnp.abs(out - ref)))
        raise AssertionError(f"Pallas output does not match reference (max abs err {err})")
    print("KERNEL_OK")
</pallas_src>

<mosaic_0001>
module attributes {stable_mosaic.version = 11 : i64} {
  func.func @kernel(%arg0: i32, %arg1: memref<1x8x64xf32, #tpu.memory_space<vmem>>, %arg2: memref<1x8x128xf32, #tpu.memory_space<vmem>>, %arg3: memref<3x64x128xf32, #tpu.memory_space<vmem>>, %arg4: memref<3x128x128xf32, #tpu.memory_space<vmem>>, %arg5: memref<3x128x128xf32, #tpu.memory_space<vmem>>, %arg6: memref<3x128x128xf32, #tpu.memory_space<vmem>>, %arg7: memref<1x128xf32, #tpu.memory_space<vmem>>, %arg8: memref<1x128xf32, #tpu.memory_space<vmem>>, %arg9: memref<1x128xf32, #tpu.memory_space<vmem>>, %arg10: memref<1x8x128xf32, #tpu.memory_space<vmem>>, %arg11: memref<17x128xf32, #tpu.memory_space<vmem>>) attributes {dimension_semantics = [#tpu.dimension_semantics<parallel>], iteration_bounds = array<i64: 2>, scalar_prefetch = 0 : i64, scratch_operands = 1 : i64, tpu.core_type = #tpu.core_type<tc>, window_params = [{transform_indices = @transform_0, window_bounds = array<i64: 1, 8, 64>}, {transform_indices = @transform_1, window_bounds = array<i64: 1, 8, 128>}, {pipeline_mode = #tpu.pipeline_mode<synchronous>, transform_indices = @transform_2, window_bounds = array<i64: 3, 64, 128>}, {pipeline_mode = #tpu.pipeline_mode<synchronous>, transform_indices = @transform_3, window_bounds = array<i64: 3, 128, 128>}, {pipeline_mode = #tpu.pipeline_mode<synchronous>, transform_indices = @transform_4, window_bounds = array<i64: 3, 128, 128>}, {pipeline_mode = #tpu.pipeline_mode<synchronous>, transform_indices = @transform_5, window_bounds = array<i64: 3, 128, 128>}, {pipeline_mode = #tpu.pipeline_mode<synchronous>, transform_indices = @transform_6, window_bounds = array<i64: 1, 128>}, {pipeline_mode = #tpu.pipeline_mode<synchronous>, transform_indices = @transform_7, window_bounds = array<i64: 1, 128>}, {pipeline_mode = #tpu.pipeline_mode<synchronous>, transform_indices = @transform_8, window_bounds = array<i64: 1, 128>}, {transform_indices = @transform_9, window_bounds = array<i64: 1, 8, 128>}]} {
    %cst = arith.constant 0.000000e+00 : f32
    %0 = vector.broadcast %cst : f32 to vector<1x128xf32>
    %c7 = arith.constant 7 : index
    %c0 = arith.constant 0 : index
    %1 = vector.load %arg11[%c7, %c0] : memref<17x128xf32, #tpu.memory_space<vmem>>, vector<1x128xf32>
    tpu.vector_store %arg11[%c7, %c0], %0 {strides = array<i32>} : memref<17x128xf32, #tpu.memory_space<vmem>>, vector<1x128xf32>,
    %cst_0 = arith.constant 0.000000e+00 : f32
    %2 = vector.broadcast %cst_0 : f32 to vector<1x128xf32>
    %c16 = arith.constant 16 : index
    %c0_1 = arith.constant 0 : index
    %3 = vector.load %arg11[%c16, %c0_1] : memref<17x128xf32, #tpu.memory_space<vmem>>, vector<1x128xf32>
    tpu.vector_store %arg11[%c16, %c0_1], %2 {strides = array<i32>} : memref<17x128xf32, #tpu.memory_space<vmem>>, vector<1x128xf32>,
    %c0_2 = arith.constant 0 : index
    %c0_3 = arith.constant 0 : index
    %c0_4 = arith.constant 0 : index
    %4 = vector.load %arg1[%c0_2, %c0_3, %c0_4] : memref<1x8x64xf32, #tpu.memory_space<vmem>>, vector<1x8x64xf32>
    %5 = vector.shape_cast %4 : vector<1x8x64xf32> to vector<8x64xf32>
    %c8 = arith.constant 8 : index
    %c0_5 = arith.constant 0 : index
    %6 = vector.load %arg11[%c8, %c0_5] : memref<17x128xf32, #tpu.memory_space<vmem>>, vector<8x64xf32>
    tpu.vector_store %arg11[%c8, %c0_5], %5 {strides = array<i32>} : memref<17x128xf32, #tpu.memory_space<vmem>>, vector<8x64xf32>,
    %c7_6 = arith.constant 7 : index
    %c0_7 = arith.constant 0 : index
    %7 = vector.load %arg11[%c7_6, %c0_7] : memref<17x128xf32, #tpu.memory_space<vmem>>, vector<8x64xf32>
    %c0_8 = arith.constant 0 : index
    %c0_9 = arith.constant 0 : index
    %c0_10 = arith.constant 0 : index
    %8 = vector.load %arg3[%c0_8, %c0_9, %c0_10] : memref<3x64x128xf32, #tpu.memory_space<vmem>>, vector<1x64x128xf32>
    %9 = vector.shape_cast %8 : vector<1x64x128xf32> to vector<64x128xf32>
    %cst_11 = arith.constant dense<0.000000e+00> : vector<8x128xf32>
    %10 = tpu.matmul %7, %9, %cst_11 {dimension_numbers = #tpu.dot_dimension_numbers<[1], [0], [0], [1], [0, 0, 1, 1], [], []>} : vector<8x64xf32>, vector<64x128xf32>, vector<8x128xf32> -> vector<8x128xf32>
    %c8_12 = arith.constant 8 : index
    %c0_13 = arith.constant 0 : index
    %11 = vector.load %arg11[%c8_12, %c0_13] : memref<17x128xf32, #tpu.memory_space<vmem>>, vector<8x64xf32>
    %c1 = arith.constant 1 : index
    %c0_14 = arith.constant 0 : index
    %c0_15 = arith.constant 0 : index
    %12 = vector.load %arg3[%c1, %c0_14, %c0_15] : memref<3x64x128xf32, #tpu.memory_space<vmem>>, vector<1x64x128xf32>
    %13 = vector.shape_cast %12 : vector<1x64x128xf32> to vector<64x128xf32>
    %cst_16 = arith.constant dense<0.000000e+00> : vector<8x128xf32>
    %14 = tpu.matmul %11, %13, %cst_16 {dimension_numbers = #tpu.dot_dimension_numbers<[1], [0], [0], [1], [0, 0, 1, 1], [], []>} : vector<8x64xf32>, vector<64x128xf32>, vector<8x128xf32> -> vector<8x128xf32>
    %15 = arith.addf %10, %14 : vector<8x128xf32>
    %c9 = arith.constant 9 : index
    %c0_17 = arith.constant 0 : index
    %16 = vector.load %arg11[%c9, %c0_17] : memref<17x128xf32, #tpu.memory_space<vmem>>, vector<8x64xf32>
    %c2 = arith.constant 2 : index
    %c0_18 = arith.constant 0 : index
    %c0_19 = arith.constant 0 : index
    %17 = vector.load %arg3[%c2, %c0_18, %c0_19] : memref<3x64x128xf32, #tpu.memory_space<vmem>>, vector<1x64x128xf32>
    %18 = vector.shape_cast %17 : vector<1x64x128xf32> to vector<64x128xf32>
    %cst_20 = arith.constant dense<0.000000e+00> : vector<8x128xf32>
    %19 = tpu.matmul %16, %18, %cst_20 {dimension_numbers = #tpu.dot_dimension_numbers<[1], [0], [0], [1], [0, 0, 1, 1], [], []>} : vector<8x64xf32>, vector<64x128xf32>, vector<8x128xf32> -> vector<8x128xf32>
    %20 = arith.addf %15, %19 : vector<8x128xf32>
    %c0_21 = arith.constant 0 : index
    %c0_22 = arith.constant 0 : index
    %21 = vector.load %arg7[%c0_21, %c0_22] : memref<1x128xf32, #tpu.memory_space<vmem>>, vector<1x128xf32>
    %22 = vector.broadcast %21 : vector<1x128xf32> to vector<8x128xf32>
    %23 = arith.addf %20, %22 : vector<8x128xf32>
    %c8_23 = arith.constant 8 : index
    %c0_24 = arith.constant 0 : index
    %24 = vector.load %arg11[%c8_23, %c0_24] : memref<17x128xf32, #tpu.memory_space<vmem>>, vector<8x128xf32>
    tpu.vector_store %arg11[%c8_23, %c0_24], %23 {strides = array<i32>} : memref<17x128xf32, #tpu.memory_space<vmem>>, vector<8x128xf32>,
    %c7_25 = arith.constant 7 : index
    %c0_26 = arith.constant 0 : index
    %25 = vector.load %arg11[%c7_25, %c0_26] : memref<17x128xf32, #tpu.memory_space<vmem>>, vector<8x128xf32>
    %c0_27 = arith.constant 0 : index
    %c0_28 = arith.constant 0 : index
    %c0_29 = arith.constant 0 : index
    %26 = vector.load %arg4[%c0_27, %c0_28, %c0_29] : memref<3x128x128xf32, #tpu.memory_space<vmem>>, vector<1x128x128xf32>
    %27 = vector.shape_cast %26 : vector<1x128x128xf32> to vector<128x128xf32>
    %cst_30 = arith.constant dense<0.000000e+00> : vector<8x128xf32>
    %28 = tpu.matmul %25, %27, %cst_30 {dimension_numbers = #tpu.dot_dimension_numbers<[1], [0], [0], [1], [0, 0, 1, 1], [], []>} : vector<8x128xf32>, vector<128x128xf32>, vector<8x128xf32> -> vector<8x128xf32>
    %c8_31 = arith.constant 8 : index
    %c0_32 = arith.constant 0 : index
    %29 = vector.load %arg11[%c8_31, %c0_32] : memref<17x128xf32, #tpu.memory_space<vmem>>, vector<8x128xf32>
    %c1_33 = arith.constant 1 : index
    %c0_34 = arith.constant 0 : index
    %c0_35 = arith.constant 0 : index
    %30 = vector.load %arg4[%c1_33, %c0_34, %c0_35] : memref<3x128x128xf32, #tpu.memory_space<vmem>>, vector<1x128x128xf32>
    %31 = vector.shape_cast %30 : vector<1x128x128xf32> to vector<128x128xf32>
    %cst_36 = arith.constant dense<0.000000e+00> : vector<8x128xf32>
    %32 = tpu.matmul %29, %31, %cst_36 {dimension_numbers = #tpu.dot_dimension_numbers<[1], [0], [0], [1], [0, 0, 1, 1], [], []>} : vector<8x128xf32>, vector<128x128xf32>, vector<8x128xf32> -> vector<8x128xf32>
    %33 = arith.addf %28, %32 : vector<8x128xf32>
    %c9_37 = arith.constant 9 : index
    %c0_38 = arith.constant 0 : index
    %34 = vector.load %arg11[%c9_37, %c0_38] : memref<17x128xf32, #tpu.memory_space<vmem>>, vector<8x128xf32>
    %c2_39 = arith.constant 2 : index
    %c0_40 = arith.constant 0 : index
    %c0_41 = arith.constant 0 : index
    %35 = vector.load %arg4[%c2_39, %c0_40, %c0_41] : memref<3x128x128xf32, #tpu.memory_space<vmem>>, vector<1x128x128xf32>
    %36 = vector.shape_cast %35 : vector<1x128x128xf32> to vector<128x128xf32>
    %cst_42 = arith.constant dense<0.000000e+00> : vector<8x128xf32>
    %37 = tpu.matmul %34, %36, %cst_42 {dimension_numbers = #tpu.dot_dimension_numbers<[1], [0], [0], [1], [0, 0, 1, 1], [], []>} : vector<8x128xf32>, vector<128x128xf32>, vector<8x128xf32> -> vector<8x128xf32>
    %38 = arith.addf %33, %37 : vector<8x128xf32>
    %c0_43 = arith.constant 0 : index
    %c0_44 = arith.constant 0 : index
    %c0_45 = arith.constant 0 : index
    %39 = vector.load %arg2[%c0_43, %c0_44, %c0_45] : memref<1x8x128xf32, #tpu.memory_space<vmem>>, vector<1x8x128xf32>
    %40 = vector.shape_cast %39 : vector<1x8x128xf32> to vector<8x128xf32>
    %c8_46 = arith.constant 8 : index
    %c0_47 = arith.constant 0 : index
    %41 = vector.load %arg11[%c8_46, %c0_47] : memref<17x128xf32, #tpu.memory_space<vmem>>, vector<8x128xf32>
    tpu.vector_store %arg11[%c8_46, %c0_47], %40 {strides = array<i32>} : memref<17x128xf32, #tpu.memory_space<vmem>>, vector<8x128xf32>,
    %c7_48 = arith.constant 7 : index
    %c0_49 = arith.constant 0 : index
    %42 = vector.load %arg11[%c7_48, %c0_49] : memref<17x128xf32, #tpu.memory_space<vmem>>, vector<8x128xf32>
    %c0_50 = arith.constant 0 : index
    %c0_51 = arith.constant 0 : index
    %c0_52 = arith.constant 0 : index
    %43 = vector.load %arg5[%c0_50, %c0_51, %c0_52] : memref<3x128x128xf32, #tpu.memory_space<vmem>>, vector<1x128x128xf32>
    %44 = vector.shape_cast %43 : vector<1x128x128xf32> to vector<128x128xf32>
    %cst_53 = arith.constant dense<0.000000e+00> : vector<8x128xf32>
    %45 = tpu.matmul %42, %44, %cst_53 {dimension_numbers = #tpu.dot_dimension_numbers<[1], [0], [0], [1], [0, 0, 1, 1], [], []>} : vector<8x128xf32>, vector<128x128xf32>, vector<8x128xf32> -> vector<8x128xf32>
    %c8_54 = arith.constant 8 : index
    %c0_55 = arith.constant 0 : index
    %46 = vector.load %arg11[%c8_54, %c0_55] : memref<17x128xf32, #tpu.memory_space<vmem>>, vector<8x128xf32>
    %c1_56 = arith.constant 1 : index
    %c0_57 = arith.constant 0 : index
    %c0_58 = arith.constant 0 : index
    %47 = vector.load %arg5[%c1_56, %c0_57, %c0_58] : memref<3x128x128xf32, #tpu.memory_space<vmem>>, vector<1x128x128xf32>
    %48 = vector.shape_cast %47 : vector<1x128x128xf32> to vector<128x128xf32>
    %cst_59 = arith.constant dense<0.000000e+00> : vector<8x128xf32>
    %49 = tpu.matmul %46, %48, %cst_59 {dimension_numbers = #tpu.dot_dimension_numbers<[1], [0], [0], [1], [0, 0, 1, 1], [], []>} : vector<8x128xf32>, vector<128x128xf32>, vector<8x128xf32> -> vector<8x128xf32>
    %50 = arith.addf %45, %49 : vector<8x128xf32>
    %c9_60 = arith.constant 9 : index
    %c0_61 = arith.constant 0 : index
    %51 = vector.load %arg11[%c9_60, %c0_61] : memref<17x128xf32, #tpu.memory_space<vmem>>, vector<8x128xf32>
    %c2_62 = arith.constant 2 : index
    %c0_63 = arith.constant 0 : index
    %c0_64 = arith.constant 0 : index
    %52 = vector.load %arg5[%c2_62, %c0_63, %c0_64] : memref<3x128x128xf32, #tpu.memory_space<vmem>>, vector<1x128x128xf32>
    %53 = vector.shape_cast %52 : vector<1x128x128xf32> to vector<128x128xf32>
    %cst_65 = arith.constant dense<0.000000e+00> : vector<8x128xf32>
    %54 = tpu.matmul %51, %53, %cst_65 {dimension_numbers = #tpu.dot_dimension_numbers<[1], [0], [0], [1], [0, 0, 1, 1], [], []>} : vector<8x128xf32>, vector<128x128xf32>, vector<8x128xf32> -> vector<8x128xf32>
    %55 = arith.addf %50, %54 : vector<8x128xf32>
    %56 = arith.addf %38, %55 : vector<8x128xf32>
    %c0_66 = arith.constant 0 : index
    %c0_67 = arith.constant 0 : index
    %57 = vector.load %arg8[%c0_66, %c0_67] : memref<1x128xf32, #tpu.memory_space<vmem>>, vector<1x128xf32>
    %58 = vector.broadcast %57 : vector<1x128xf32> to vector<8x128xf32>
    %59 = arith.addf %56, %58 : vector<8x128xf32>
    %cst_68 = arith.constant 0.000000e+00 : f32
    %60 = vector.broadcast %cst_68 : f32 to vector<8x128xf32>
    %61 = arith.maximumf %59, %60 : vector<8x128xf32>
    %c8_69 = arith.constant 8 : index
    %c0_70 = arith.constant 0 : index
    %62 = vector.load %arg11[%c8_69, %c0_70] : memref<17x128xf32, #tpu.memory_space<vmem>>, vector<8x128xf32>
    tpu.vector_store %arg11[%c8_69, %c0_70], %61 {strides = array<i32>} : memref<17x128xf32, #tpu.memory_space<vmem>>, vector<8x128xf32>,
    %c7_71 = arith.constant 7 : index
    %c0_72 = arith.constant 0 : index
    %63 = vector.load %arg11[%c7_71, %c0_72] : memref<17x128xf32, #tpu.memory_space<vmem>>, vector<8x128xf32>
    %c0_73 = arith.constant 0 : index
    %c0_74 = arith.constant 0 : index
    %c0_75 = arith.constant 0 : index
    %64 = vector.load %arg6[%c0_73, %c0_74, %c0_75] : memref<3x128x128xf32, #tpu.memory_space<vmem>>, vector<1x128x128xf32>
    %65 = vector.shape_cast %64 : vector<1x128x128xf32> to vector<128x128xf32>
    %cst_76 = arith.constant dense<0.000000e+00> : vector<8x128xf32>
    %66 = tpu.matmul %63, %65, %cst_76 {dimension_numbers = #tpu.dot_dimension_numbers<[1], [0], [0], [1], [0, 0, 1, 1], [], []>} : vector<8x128xf32>, vector<128x128xf32>, vector<8x128xf32> -> vector<8x128xf32>
    %c8_77 = arith.constant 8 : index
    %c0_78 = arith.constant 0 : index
    %67 = vector.load %arg11[%c8_77, %c0_78] : memref<17x128xf32, #tpu.memory_space<vmem>>, vector<8x128xf32>
    %c1_79 = arith.constant 1 : index
    %c0_80 = arith.constant 0 : index
    %c0_81 = arith.constant 0 : index
    %68 = vector.load %arg6[%c1_79, %c0_80, %c0_81] : memref<3x128x128xf32, #tpu.memory_space<vmem>>, vector<1x128x128xf32>
    %69 = vector.shape_cast %68 : vector<1x128x128xf32> to vector<128x128xf32>
    %cst_82 = arith.constant dense<0.000000e+00> : vector<8x128xf32>
    %70 = tpu.matmul %67, %69, %cst_82 {dimension_numbers = #tpu.dot_dimension_numbers<[1], [0], [0], [1], [0, 0, 1, 1], [], []>} : vector<8x128xf32>, vector<128x128xf32>, vector<8x128xf32> -> vector<8x128xf32>
    %71 = arith.addf %66, %70 : vector<8x128xf32>
    %c9_83 = arith.constant 9 : index
    %c0_84 = arith.constant 0 : index
    %72 = vector.load %arg11[%c9_83, %c0_84] : memref<17x128xf32, #tpu.memory_space<vmem>>, vector<8x128xf32>
    %c2_85 = arith.constant 2 : index
    %c0_86 = arith.constant 0 : index
    %c0_87 = arith.constant 0 : index
    %73 = vector.load %arg6[%c2_85, %c0_86, %c0_87] : memref<3x128x128xf32, #tpu.memory_space<vmem>>, vector<1x128x128xf32>
    %74 = vector.shape_cast %73 : vector<1x128x128xf32> to vector<128x128xf32>
    %cst_88 = arith.constant dense<0.000000e+00> : vector<8x128xf32>
    %75 = tpu.matmul %72, %74, %cst_88 {dimension_numbers = #tpu.dot_dimension_numbers<[1], [0], [0], [1], [0, 0, 1, 1], [], []>} : vector<8x128xf32>, vector<128x128xf32>, vector<8x128xf32> -> vector<8x128xf32>
    %76 = arith.addf %71, %75 : vector<8x128xf32>
    %c0_89 = arith.constant 0 : index
    %c0_90 = arith.constant 0 : index
    %77 = vector.load %arg9[%c0_89, %c0_90] : memref<1x128xf32, #tpu.memory_space<vmem>>, vector<1x128xf32>
    %78 = vector.broadcast %77 : vector<1x128xf32> to vector<8x128xf32>
    %79 = arith.addf %76, %78 : vector<8x128xf32>
    %cst_91 = arith.constant 0.000000e+00 : f32
    %80 = vector.broadcast %cst_91 : f32 to vector<8x128xf32>
    %81 = arith.maximumf %79, %80 : vector<8x128xf32>
    %c0_92 = arith.constant 0 : index
    %c0_93 = arith.constant 0 : index
    %c0_94 = arith.constant 0 : index
    %82 = vector.load %arg10[%c0_92, %c0_93, %c0_94] : memref<1x8x128xf32, #tpu.memory_space<vmem>>, vector<1x8x128xf32>
    %83 = vector.shape_cast %82 : vector<1x8x128xf32> to vector<8x128xf32>
    %84 = vector.shape_cast %81 : vector<8x128xf32> to vector<1x8x128xf32>
    tpu.vector_store %arg10[%c0_92, %c0_93, %c0_94], %84 {strides = array<i32>} : memref<1x8x128xf32, #tpu.memory_space<vmem>>, vector<1x8x128xf32>,
    return
  }
  func.func @transform_0(%arg0: i32) -> (i32, i32, i32) {
    %c0_i32 = arith.constant 0 : i32
    %c0_i32_0 = arith.constant 0 : i32
    %c0_i32_1 = arith.constant 0 : i32
    return %arg0, %c0_i32, %c0_i32_0 : i32, i32, i32
  }
  func.func @transform_1(%arg0: i32) -> (i32, i32, i32) {
    %c0_i32 = arith.constant 0 : i32
    %c0_i32_0 = arith.constant 0 : i32
    %c0_i32_1 = arith.constant 0 : i32
    return %arg0, %c0_i32, %c0_i32_0 : i32, i32, i32
  }
  func.func @transform_2(%arg0: i32) -> (i32, i32, i32) {
    %c0_i32 = arith.constant 0 : i32
    %c0_i32_0 = arith.constant 0 : i32
    %c0_i32_1 = arith.constant 0 : i32
    %c0_i32_2 = arith.constant 0 : i32
    return %c0_i32, %c0_i32_0, %c0_i32_1 : i32, i32, i32
  }
  func.func @transform_3(%arg0: i32) -> (i32, i32, i32) {
    %c0_i32 = arith.constant 0 : i32
    %c0_i32_0 = arith.constant 0 : i32
    %c0_i32_1 = arith.constant 0 : i32
    %c0_i32_2 = arith.constant 0 : i32
    return %c0_i32, %c0_i32_0, %c0_i32_1 : i32, i32, i32
  }
  func.func @transform_4(%arg0: i32) -> (i32, i32, i32) {
    %c0_i32 = arith.constant 0 : i32
    %c0_i32_0 = arith.constant 0 : i32
    %c0_i32_1 = arith.constant 0 : i32
    %c0_i32_2 = arith.constant 0 : i32
    return %c0_i32, %c0_i32_0, %c0_i32_1 : i32, i32, i32
  }
  func.func @transform_5(%arg0: i32) -> (i32, i32, i32) {
    %c0_i32 = arith.constant 0 : i32
    %c0_i32_0 = arith.constant 0 : i32
    %c0_i32_1 = arith.constant 0 : i32
    %c0_i32_2 = arith.constant 0 : i32
    return %c0_i32, %c0_i32_0, %c0_i32_1 : i32, i32, i32
  }
  func.func @transform_6(%arg0: i32) -> (i32, i32) {
    %c0_i32 = arith.constant 0 : i32
    %c0_i32_0 = arith.constant 0 : i32
    %c0_i32_1 = arith.constant 0 : i32
    return %c0_i32, %c0_i32_0 : i32, i32
  }
  func.func @transform_7(%arg0: i32) -> (i32, i32) {
    %c0_i32 = arith.constant 0 : i32
    %c0_i32_0 = arith.constant 0 : i32
    %c0_i32_1 = arith.constant 0 : i32
    return %c0_i32, %c0_i32_0 : i32, i32
  }
  func.func @transform_8(%arg0: i32) -> (i32, i32) {
    %c0_i32 = arith.constant 0 : i32
    %c0_i32_0 = arith.constant 0 : i32
    %c0_i32_1 = arith.constant 0 : i32
    return %c0_i32, %c0_i32_0 : i32, i32
  }
  func.func @transform_9(%arg0: i32) -> (i32, i32, i32) {
    %c0_i32 = arith.constant 0 : i32
    %c0_i32_0 = arith.constant 0 : i32
    %c0_i32_1 = arith.constant 0 : i32
    return %arg0, %c0_i32, %c0_i32_0 : i32, i32, i32
  }
}

</mosaic_0001>

<bundles_post_ra>
// kernel: tile.23
= control target key start
LH: loop header
LB: loop body
LE: loop exit
PB: predicated region body
PF: predicated region fallthrough
CT: control target
= control target key end

     0   :  { %s40_s0 = inlined_call_operand.vmem [shape: f32[4], index: 0, kind: input, shape index: {}]   ;;  %s41_s1 = inlined_call_operand.vmem [shape: f32[32,4], index: 1, kind: output, shape index: {}]  }
   0x1   :  { %v4_v0 = vld [vmem:[%s40_s0] ss:$0 sm:$0xff] }
   0x2   :  { %5 = vst [vmem:[%s41_s1] sm:$0xff] %v4_v0  ;;  %12 = vst [vmem:[%s41_s1 + $0x8] sm:$0xff] %v4_v0 }
   0x3   :  { %13 = vst [vmem:[%s41_s1 + $0x10] sm:$0xff] %v4_v0  ;;  %14 = vst [vmem:[%s41_s1 + $0x18] sm:$0xff] %v4_v0 }

// kernel: tile.24
= control target key start
LH: loop header
LB: loop body
LE: loop exit
PB: predicated region body
PF: predicated region fallthrough
CT: control target
= control target key end

     0   :  { %s259_s10 = smov 124   ;;  %s260_s11 = smov 116   ;;  %vm3_vm0 = vcmask 31744   ;;  %vm9_vm1 = vcmask 1048544   ;;  %vm15_vm2 = vcmask 1015744   ;;  %vm21_vm3 = vcmask 982944   ;;  %s399_s0 = inlined_call_operand.vmem [shape: f32[32,4], index: 0, kind: input, shape index: {}]   ;;  %s400_s1 = inlined_call_operand.vmem [shape: f32[1,128], index: 1, kind: output, shape index: {}]  }
   0x1   :  { %v197_v0 = vld [vmem:[%s399_s0 + $0x1f] sm:$0x1]   ;;  %v199_v1 = vld [vmem:[%s399_s0 + $0x1d] sm:$0x1]   ;;  %v198_v2 = vld [vmem:[%s399_s0 + $0x1e] sm:$0x1]  }
   0x2   :  { %7 = vrot.lane.b32.xlu0 %v197_v0, %s259_s10  ;;  %19 = vrot.lane.b32.xlu1 %v199_v1, %s260_s11  ;;  %v200_v3 = vld [vmem:[%s399_s0 + $0x1c] sm:$0x1]   ;;  %s261_s16 = smov 120   ;;  %s262_s17 = smov 112   ;;  %v201_v4 = vld [vmem:[%s399_s0 + $0x1b] sm:$0x1]  }
   0x3   :  { %v202_v5 = vld [vmem:[%s399_s0 + $0x1a] sm:$0x1]   ;;  %s263_s22 = smov 108   ;;  %s264_s23 = smov 104   ;;  %v203_v6 = vld [vmem:[%s399_s0 + $0x19] sm:$0x1]  }
   0x4   :  { %v204_v7 = vld [vmem:[%s399_s0 + $0x18] sm:$0x1]   ;;  %s265_s28 = smov 100   ;;  %s266_s29 = smov 96   ;;  %v205_v8 = vld [vmem:[%s399_s0 + $0x17] sm:$0x1]  }
   0x5   :  { %v206_v9 = vld [vmem:[%s399_s0 + $0x16] sm:$0x1]   ;;  %v2_v10 = vld [vmem:[%s399_s0] sm:$0x1]   ;;  %s267_s7 = smov 92   ;;  %s268_s8 = smov 88  }
   0x6   :  { %13 = vrot.lane.b32.xlu0 %v198_v2, %s261_s16  ;;  %25 = vrot.lane.b32.xlu1 %v200_v3, %s262_s17  ;;  %4 = vst.msk [vmem:[#allocation0] sm:$0x1] %vm3_vm0, %v2_v10   ;;  %v207_v11 = vld [vmem:[%s399_s0 + $0x15] sm:$0x1]   ;;  %v208_v12 = vld [vmem:[%s399_s0 + $0x14] sm:$0x1]  }
   0x7   :  { %s269_s13 = smov 84   ;;  %s270_s14 = smov 80   ;;  %v209_v13 = vld [vmem:[%s399_s0 + $0x13] sm:$0x1]   ;;  %v210_v14 = vld [vmem:[%s399_s0 + $0x12] sm:$0x1]  }
   0x8   :  { %s271_s19 = smov 76   ;;  %s272_s20 = smov 72   ;;  %v211_v15 = vld [vmem:[%s399_s0 + $0x11] sm:$0x1]   ;;  %v212_v16 = vld [vmem:[%s399_s0 + $0x10] sm:$0x1]  }
   0x9   :  { %s273_s25 = smov 68   ;;  %s274_s26 = smov 64   ;;  %v213_v17 = vld [vmem:[%s399_s0 + $0xf] sm:$0x1]   ;;  %v214_v18 = vld [vmem:[%s399_s0 + $0xe] sm:$0x1]  }
   0xa   :  { %31 = vrot.lane.b32.xlu0 %v201_v4, %s263_s22  ;;  %37 = vrot.lane.b32.xlu1 %v202_v5, %s264_s23  ;;  %s275_s2 = smov 60   ;;  %s276_s3 = smov 56   ;;  %v215_v19 = vld [vmem:[%s399_s0 + $0xd] sm:$0x1]   ;;  %v216_v20 = vld [vmem:[%s399_s0 + $0xc] sm:$0x1]  }
   0xb   :  { %s278_s9 = smov 48   ;;  %v217_v21 = vld [vmem:[%s399_s0 + $0xb] sm:$0x1]   ;;  %v218_v22 = vld [vmem:[%s399_s0 + $0xa] sm:$0x1]   ;;  %s280_s15 = smov 40  }
   0xc   :  { %v219_v23 = vld [vmem:[%s399_s0 + $0x9] sm:$0x1]   ;;  %v220_v24 = vld [vmem:[%s399_s0 + $0x8] sm:$0x1]   ;;  %s282_s21 = smov 32   ;;  %s284_s27 = smov 24  }
   0xd   :  { %v221_v25 = vld [vmem:[%s399_s0 + $0x7] sm:$0x1]   ;;  %v222_v26 = vld [vmem:[%s399_s0 + $0x6] sm:$0x1]   ;;  %v223_v27 = vld [vmem:[%s399_s0 + $0x5] sm:$0x1]  }
   0xe   :  { %43 = vrot.lane.b32.xlu0 %v203_v6, %s265_s28  ;;  %49 = vrot.lane.b32.xlu1 %v204_v7, %s266_s29  ;;  %v224_v28 = vld [vmem:[%s399_s0 + $0x4] sm:$0x1]   ;;  %s286_s4 = smov 16   ;;  %v225_v29 = vld [vmem:[%s399_s0 + $0x3] sm:$0x1]   ;;  %s288_s10 = smov 8  }
   0xf   :  { %v226_v30 = vld [vmem:[%s399_s0 + $0x2] sm:$0x1]   ;;  %v227_v31 = vld [vmem:[%s399_s0 + $0x1] sm:$0x1]   ;;  %s289_s0 = smov 4   ;;  %vm27_vm4 = vcmask 950144  }
  0x10   :  { %vm33_vm5 = vcmask 917344   ;;  %vm39_vm6 = vcmask 884544   ;;  %vm45_vm7 = vcmask 851744   ;;  %vm51_vm8 = vcmask 818944  }
  0x11   :  { %vm57_vm9 = vcmask 786144   ;;  %vm63_vm10 = vcmask 753344   ;;  %vm69_vm11 = vcmask 720544   ;;  %vm75_vm12 = vcmask 687744  }
  0x12   :  { %55 = vrot.lane.b32.xlu0 %v205_v8, %s267_s7  ;;  %61 = vrot.lane.b32.xlu1 %v206_v9, %s268_s8  ;;  %s277_s8 = smov 52   ;;  %vm81_vm13 = vcmask 654944   ;;  %vm87_vm14 = vcmask 622144   ;;  %vm93_vm15 = vcmask 589344   ;;  %vm99_vm0 = vcmask 556544  }
  0x16   :  { %67 = vrot.lane.b32.xlu0 %v207_v11, %s269_s13  ;;  %73 = vrot.lane.b32.xlu1 %v208_v12, %s270_s14  ;;  %s279_s14 = smov 44  }
  0x1a   :  { %79 = vrot.lane.b32.xlu0 %v209_v13, %s271_s19  ;;  %85 = vrot.lane.b32.xlu1 %v210_v14, %s272_s20  ;;  %s281_s20 = smov 36  }
  0x1e   :  { %91 = vrot.lane.b32.xlu0 %v211_v15, %s273_s25  ;;  %97 = vrot.lane.b32.xlu1 %v212_v16, %s274_s26  ;;  %s283_s26 = smov 28  }
  0x22   :  { %103 = vrot.lane.b32.xlu0 %v213_v17, %s275_s2  ;;  %109 = vrot.lane.b32.xlu1 %v214_v18, %s276_s3  ;;  %s285_s3 = smov 20  }
  0x26   :  { %115 = vrot.lane.b32.xlu0 %v215_v19, %s277_s8  ;;  %121 = vrot.lane.b32.xlu1 %v216_v20, %s278_s9  ;;  %s287_s9 = smov 12  }
  0x2a   :  { %127 = vrot.lane.b32.xlu0 %v217_v21, %s279_s14  ;;  %133 = vrot.lane.b32.xlu1 %v218_v22, %s280_s15 }
  0x2e   :  { %139 = vrot.lane.b32.xlu0 %v219_v23, %s281_s20  ;;  %145 = vrot.lane.b32.xlu1 %v220_v24, %s282_s21 }
  0x32   :  { %151 = vrot.lane.b32.xlu0 %v221_v25, %s283_s26  ;;  %157 = vrot.lane.b32.xlu1 %v222_v26, %s284_s27 }
  0x36   :  { %163 = vrot.lane.b32.xlu0 %v223_v27, %s285_s3  ;;  %169 = vrot.lane.b32.xlu1 %v224_v28, %s286_s4 }
  0x3a   :  { %175 = vrot.lane.b32.xlu0 %v225_v29, %s287_s9  ;;  %181 = vrot.lane.b32.xlu1 %v226_v30, %s288_s10 }
  0x3e   :  { %187 = vrot.lane.b32.xlu0 %v227_v31, %s289_s0 }
  0x74   :  { %v8_v32 = vpop.permute.xlu0 %7   ;;  %v20_v33 = vpop.permute.xlu1 %19  }
  0x75   :  { %10 = vst.msk [vmem:[#allocation0] sm:$0x1] %vm9_vm1, %v8_v32   ;;  %vm105_vm1 = vcmask 523744  }
  0x78   :  { %v14_v34 = vpop.permute.xlu0 %13   ;;  %v26_v35 = vpop.permute.xlu1 %25  }
  0x79   :  { %16 = vst.msk [vmem:[#allocation0] sm:$0x1] %vm15_vm2, %v14_v34   ;;  %vm111_vm2 = vcmask 490944  }
  0x7a   :  { %22 = vst.msk [vmem:[#allocation0] sm:$0x1] %vm21_vm3, %v20_v33   ;;  %vm117_vm3 = vcmask 458144  }
  0x7b   :  { %28 = vst.msk [vmem:[#allocation0] sm:$0x1] %vm27_vm4, %v26_v35   ;;  %vm123_vm4 = vcmask 425344  }
  0x7c   :  { %v32_v36 = vpop.permute.xlu0 %31   ;;  %v38_v37 = vpop.permute.xlu1 %37  }
  0x7d   :  { %34 = vst.msk [vmem:[#allocation0] sm:$0x1] %vm33_vm5, %v32_v36   ;;  %vm129_vm5 = vcmask 392544  }
  0x7e   :  { %40 = vst.msk [vmem:[#allocation0] sm:$0x1] %vm39_vm6, %v38_v37   ;;  %vm135_vm6 = vcmask 359744  }
  0x80   :  { %v44_v38 = vpop.permute.xlu0 %43   ;;  %v50_v39 = vpop.permute.xlu1 %49  }
  0x81   :  { %46 = vst.msk [vmem:[#allocation0] sm:$0x1] %vm45_vm7, %v44_v38   ;;  %vm141_vm7 = vcmask 326944  }
  0x82   :  { %52 = vst.msk [vmem:[#allocation0] sm:$0x1] %vm51_vm8, %v50_v39   ;;  %vm147_vm8 = vcmask 294144  }
  0x84   :  { %v56_v40 = vpop.permute.xlu0 %55   ;;  %v62_v41 = vpop.permute.xlu1 %61  }
  0x85   :  { %58 = vst.msk [vmem:[#allocation0] sm:$0x1] %vm57_vm9, %v56_v40   ;;  %vm153_vm9 = vcmask 261344  }
  0x86   :  { %64 = vst.msk [vmem:[#allocation0] sm:$0x1] %vm63_vm10, %v62_v41   ;;  %vm159_vm10 = vcmask 228544  }
  0x88   :  { %v68_v42 = vpop.permute.xlu0 %67   ;;  %v74_v43 = vpop.permute.xlu1 %73  }
  0x89   :  { %70 = vst.msk [vmem:[#allocation0] sm:$0x1] %vm69_vm11, %v68_v42   ;;  %vm165_vm11 = vcmask 195744  }
  0x8a   :  { %76 = vst.msk [vmem:[#allocation0] sm:$0x1] %vm75_vm12, %v74_v43   ;;  %vm171_vm12 = vcmask 162944  }
  0x8c   :  { %v80_v44 = vpop.permute.xlu0 %79   ;;  %v86_v45 = vpop.permute.xlu1 %85  }
  0x8d   :  { %82 = vst.msk [vmem:[#allocation0] sm:$0x1] %vm81_vm13, %v80_v44   ;;  %vm177_vm13 = vcmask 130144  }
  0x8e   :  { %88 = vst.msk [vmem:[#allocation0] sm:$0x1] %vm87_vm14, %v86_v45   ;;  %vm183_vm14 = vcmask 97344  }
  0x90   :  { %v92_v46 = vpop.permute.xlu0 %91   ;;  %v98_v47 = vpop.permute.xlu1 %97  }
  0x91   :  { %94 = vst.msk [vmem:[#allocation0] sm:$0x1] %vm93_vm15, %v92_v46   ;;  %vm189_vm15 = vcmask 64544  }
  0x92   :  { %100 = vst.msk [vmem:[#allocation0] sm:$0x1] %vm99_vm0, %v98_v47  }
  0x94   :  { %v104_v48 = vpop.permute.xlu0 %103   ;;  %v110_v49 = vpop.permute.xlu1 %109  }
  0x95   :  { %106 = vst.msk [vmem:[#allocation0] sm:$0x1] %vm105_vm1, %v104_v48  }
  0x96   :  { %112 = vst.msk [vmem:[#allocation0] sm:$0x1] %vm111_vm2, %v110_v49  }
  0x98   :  { %v116_v50 = vpop.permute.xlu0 %115   ;;  %v122_v51 = vpop.permute.xlu1 %121  }
  0x99   :  { %118 = vst.msk [vmem:[#allocation0] sm:$0x1] %vm117_vm3, %v116_v50  }
  0x9a   :  { %124 = vst.msk [vmem:[#allocation0] sm:$0x1] %vm123_vm4, %v122_v51  }
  0x9c   :  { %v128_v52 = vpop.permute.xlu0 %127   ;;  %v134_v53 = vpop.permute.xlu1 %133  }
  0x9d   :  { %130 = vst.msk [vmem:[#allocation0] sm:$0x1] %vm129_vm5, %v128_v52  }
  0x9e   :  { %136 = vst.msk [vmem:[#allocation0] sm:$0x1] %vm135_vm6, %v134_v53  }
  0xa0   :  { %v140_v54 = vpop.permute.xlu0 %139   ;;  %v146_v55 = vpop.permute.xlu1 %145  }
  0xa1   :  { %142 = vst.msk [vmem:[#allocation0] sm:$0x1] %vm141_vm7, %v140_v54  }
  0xa2   :  { %148 = vst.msk [vmem:[#allocation0] sm:$0x1] %vm147_vm8, %v146_v55  }
  0xa4   :  { %v152_v56 = vpop.permute.xlu0 %151   ;;  %v158_v57 = vpop.permute.xlu1 %157  }
  0xa5   :  { %154 = vst.msk [vmem:[#allocation0] sm:$0x1] %vm153_vm9, %v152_v56  }
  0xa6   :  { %160 = vst.msk [vmem:[#allocation0] sm:$0x1] %vm159_vm10, %v158_v57  }
  0xa8   :  { %v164_v58 = vpop.permute.xlu0 %163   ;;  %v170_v59 = vpop.permute.xlu1 %169  }
  0xa9   :  { %166 = vst.msk [vmem:[#allocation0] sm:$0x1] %vm165_vm11, %v164_v58  }
  0xaa   :  { %172 = vst.msk [vmem:[#allocation0] sm:$0x1] %vm171_vm12, %v170_v59  }
  0xac   :  { %v176_v60 = vpop.permute.xlu0 %175   ;;  %v182_v61 = vpop.permute.xlu1 %181  }
  0xad   :  { %178 = vst.msk [vmem:[#allocation0] sm:$0x1] %vm177_vm13, %v176_v60  }
  0xae   :  { %184 = vst.msk [vmem:[#allocation0] sm:$0x1] %vm183_vm14, %v182_v61  }
  0xb0   :  { %v188_v62 = vpop.permute.xlu0 %187  }
  0xb1   :  { %190 = vst.msk [vmem:[#allocation0] sm:$0x1] %vm189_vm15, %v188_v62  }
  0xb8   :  { %v194_v63 = vld [vmem:[#allocation0] sm:$0x1] }
  0xb9   :  { %196 = vst [vmem:[%s400_s1] sm:$0x1] %v194_v63 }

// kernel: unet_up_origin_forward.1
= control target key start
LH: loop header
LB: loop body
LE: loop exit
PB: predicated region body
PF: predicated region fallthrough
CT: control target
= control target key end

     0   :  { %s2492_s30 = smov 0   ;;  %s3151_s0 = inlined_call_operand.vmem [shape: f32[2,8,64], index: 0, kind: input, shape index: {}]   ;;  %s3152_s1 = inlined_call_operand.vmem [shape: f32[2,8,128], index: 1, kind: input, shape index: {}]   ;;  %s3153_s2 = inlined_call_operand.vmem [shape: f32[3,64,128], index: 2, kind: input, shape index: {}]   ;;  %s3154_s3 = inlined_call_operand.vmem [shape: f32[3,128,128], index: 3, kind: input, shape index: {}]   ;;  %s3155_s4 = inlined_call_operand.vmem [shape: f32[3,128,128], index: 4, kind: input, shape index: {}]   ;;  %s3156_s5 = inlined_call_operand.vmem [shape: f32[3,128,128], index: 5, kind: input, shape index: {}]   ;;  %s3157_s6 = inlined_call_operand.vmem [shape: f32[1,128], index: 6, kind: input, shape index: {}]   ;;  %s3158_s7 = inlined_call_operand.vmem [shape: f32[1,128], index: 7, kind: input, shape index: {}]   ;;  %s3159_s8 = inlined_call_operand.vmem [shape: f32[1,128], index: 8, kind: input, shape index: {}]   ;;  %s3160_s9 = inlined_call_operand.vmem [shape: f32[2,8,128], index: 9, kind: output, shape index: {}]  }
   0x1 LB: > { %s1488_s10 = sadd.s32 4294967295, %s2437_s30   ;;  %p1492_p0 = scmp.ge.s32.totalorder %s2437_s30, 1  ;;  %s2437_s30 = sphi %s2492_s30, %s19_s30  }
   0x2   : > { %p295_p1 = scmp.lt.s32.totalorder %s2437_s30, 3 }
   0x4   : > { %p296_p2 = pnand %p1492_p0, %p295_p1 }
   0x5   : > { %v1496_v0 = vld [vmem:[%s3153_s2 + $0x40] sm:$0xff] (!%p296_p2)  ;;  %v1497_v1 = vld [vmem:[%s3153_s2 + $0x48] sm:$0xff] (!%p296_p2)  ;;  %v2439_v3 = vmov (!%p296_p2), 0.0|0.0   ;;  %v1498_v6 = vld [vmem:[%s3153_s2 + $0x50] sm:$0xff] (!%p296_p2)  ;;  %v2440_v8 = vmov (!%p296_p2), 0.0   ;;  %p333_p3 = scmp.lt.s32.totalorder (!%p296_p2), %s1488_s10, 1 }
   0x6   : > { %299 = sbr.rel (%p296_p2) target bundleno = 800 (0x320), region = 56  ;;  %v351_v2 = vld [vmem:[%s3153_s2] sm:$0xff] (!%p296_p2)  ;;  %2168 = vmatprep.subr.bf16.mxu0 (!%p296_p2), %v2439_v3  ;;  %v2169_v4 = vpack.c.bf16 (!%p296_p2), %v1497_v1, %v1496_v0  ;;  %2180 = vmatprep.subr.bf16.mxu1 (!%p296_p2), %v2439_v3  ;;  %v352_v5 = vld [vmem:[%s3153_s2 + $0x8] sm:$0xff] (!%p296_p2)  ;;  %v1499_v7 = vld [vmem:[%s3153_s2 + $0x58] sm:$0xff] (!%p296_p2)  ;;  %345 = vst [vmem:[#allocation2 + $0x7] sm:$0x1] (!%p296_p2), %v2440_v8 }
   0x7   : > { %346 = vst [vmem:[#allocation2 + $0x10] sm:$0x1] (!%p296_p2), %v2440_v8  ;;  %v2181_v9 = vpack.c.bf16 (!%p296_p2), %v352_v5, %v351_v2  ;;  %v353_v10 = vld [vmem:[%s3153_s2 + $0x10] sm:$0xff] (!%p296_p2)  ;;  %v354_v11 = vld [vmem:[%s3153_s2 + $0x18] sm:$0xff] (!%p296_p2)  ;;  %vm2441_vm0 = vmmov (!%p296_p2), 0   ;;  %v2172_v12 = vpack.c.bf16 (!%p296_p2), %v1499_v7, %v1498_v6  ;;  %v1500_v14 = vld [vmem:[%s3153_s2 + $0x60] sm:$0xff] (!%p296_p2) }
   0x8   : > { %1812 = vmatprep.mubr.msk.f32.mxu0 (!%p296_p2), %vm2441_vm0, %v2440_v8  ;;  %1831 = vmatprep.mubr.msk.f32.mxu1 (!%p296_p2), %vm2441_vm0, %v2440_v8  ;;  %v2184_v13 = vpack.c.bf16 (!%p296_p2), %v354_v11, %v353_v10  ;;  %v1501_v15 = vld [vmem:[%s3153_s2 + $0x68] sm:$0xff] (!%p296_p2)  ;;  %v355_v16 = vld [vmem:[%s3153_s2 + $0x20] sm:$0xff] (!%p296_p2)  ;;  %vm348_vm1 = vcmask (!%p296_p2), 523264   ;;  %v1502_v21 = vld [vmem:[%s3153_s2 + $0x70] sm:$0xff] (!%p296_p2) }
   0x9   : > { %2170 = vmatpush3.bf16.msra.mxu0 (!%p296_p2), %v2169_v4  ;;  %2182 = vmatpush3.bf16.msra.mxu1 (!%p296_p2), %v2181_v9  ;;  %v356_v17 = vld [vmem:[%s3153_s2 + $0x28] sm:$0xff] (!%p296_p2)  ;;  %v2175_v18 = vpack.c.bf16 (!%p296_p2), %v1501_v15, %v1500_v14  ;;  %v1503_v22 = vld [vmem:[%s3153_s2 + $0x78] sm:$0xff] (!%p296_p2)  ;;  %v357_v23 = vld [vmem:[%s3153_s2 + $0x30] sm:$0xff] (!%p296_p2) }
   0xa   : > { %2171 = vmatprep.subr.bf16.mxu0 (!%p296_p2), %v2439_v3  ;;  %2183 = vmatprep.subr.bf16.mxu1 (!%p296_p2), %v2439_v3  ;;  %v2187_v20 = vpack.c.bf16 (!%p296_p2), %v356_v17, %v355_v16  ;;  %v358_v24 = vld [vmem:[%s3153_s2 + $0x38] sm:$0xff] (!%p296_p2)  ;;  %v2178_v25 = vpack.c.bf16 (!%p296_p2), %v1503_v22, %v1502_v21  ;;  %v1506_v27 = vld [vmem:[%s3153_s2 + $0x80] sm:$0xff] (!%p296_p2)  ;;  %v1507_v28 = vld [vmem:[%s3153_s2 + $0x88] sm:$0xff] (!%p296_p2) }
   0xb   : > { %v2190_v26 = vpack.c.bf16 (!%p296_p2), %v358_v24, %v357_v23  ;;  %v1516_v29 = vld [vmem:[%s3154_s3 + $0x80] sm:$0xff] (!%p296_p2)  ;;  %v1517_v30 = vld [vmem:[%s3154_s3 + $0x88] sm:$0xff] (!%p296_p2)  ;;  %v2193_v32 = vpack.c.bf16 (!%p296_p2), %v1507_v28, %v1506_v27  ;;  %v1508_v34 = vld [vmem:[%s3153_s2 + $0x90] sm:$0xff] (!%p296_p2) }
   0xc   : > { %v1509_v35 = vld [vmem:[%s3153_s2 + $0x98] sm:$0xff] (!%p296_p2)  ;;  %v2205_v36 = vpack.c.bf16 (!%p296_p2), %v1517_v30, %v1516_v29  ;;  %v1510_v38 = vld [vmem:[%s3153_s2 + $0xa0] sm:$0xff] (!%p296_p2)  ;;  %v1511_v39 = vld [vmem:[%s3153_s2 + $0xa8] sm:$0xff] (!%p296_p2) }
   0xd   : > { %s3162_s10 = smov (!%p333_p3, %s1488_s10), 1  ;;  %2173 = vmatpush3.bf16.msra.mxu0 %v2172_v12  ;;  %2185 = vmatpush3.bf16.msra.mxu1 %v2184_v13  ;;  %v2196_v37 = vpack.c.bf16 %v1509_v35, %v1508_v34  ;;  %v2199_v40 = vpack.c.bf16 %v1511_v39, %v1510_v38  ;;  %v1512_v41 = vld [vmem:[%s3153_s2 + $0xb0] sm:$0xff]  ;;  %v1513_v42 = vld [vmem:[%s3153_s2 + $0xb8] sm:$0xff]  ;;  %v609_v44 = vld [vmem:[%s3154_s3] sm:$0xff] }
   0xe   : > { %s2546_s16 = sshll.u32 %s3162_s10, 3  ;;  %2174 = vmatprep.subr.bf16.mxu0 %v2439_v3  ;;  %2186 = vmatprep.subr.bf16.mxu1 %v2439_v3  ;;  %v2202_v43 = vpack.c.bf16 %v1513_v42, %v1512_v41  ;;  %v610_v45 = vld [vmem:[%s3154_s3 + $0x8] sm:$0xff]  ;;  %v1518_v48 = vld [vmem:[%s3154_s3 + $0x90] sm:$0xff]  ;;  %v1519_v49 = vld [vmem:[%s3154_s3 + $0x98] sm:$0xff] }
   0xf   : > { %s336_s19 = scalar_lea.vmem %s3151_s0, %s2546_s16  ;;  %v2229_v47 = vpack.c.bf16 %v610_v45, %v609_v44  ;;  %v2208_v50 = vpack.c.bf16 %v1519_v49, %v1518_v48  ;;  %v1520_v51 = vld [vmem:[%s3154_s3 + $0xa0] sm:$0xff]  ;;  %v1521_v52 = vld [vmem:[%s3154_s3 + $0xa8] sm:$0xff]  ;;  %v611_v54 = vld [vmem:[%s3154_s3 + $0x10] sm:$0xff]  ;;  %s340_s13 = scalar_lea.vmem %s3152_s1, %s2546_s16 }
  0x10   : > { %v347_v19 = vld [vmem:[%s336_s19] sm:$0xff]  ;;  %v2211_v53 = vpack.c.bf16 %v1521_v52, %v1520_v51  ;;  %v612_v55 = vld [vmem:[%s3154_s3 + $0x18] sm:$0xff]  ;;  %v1522_v56 = vld [vmem:[%s3154_s3 + $0xb0] sm:$0xff]  ;;  %s344_s20 = scalar_lea.vmem %s3160_s9, %s2546_s16 }
  0x11   : > { %349 = vst.msk [vmem:[#allocation2 + $0x8] sm:$0xff] %vm348_vm1, %v347_v19  ;;  %2176 = vmatpush3.bf16.msra.mxu0 %v2175_v18  ;;  %2188 = vmatpush3.bf16.msra.mxu1 %v2187_v20  ;;  %v2232_v57 = vpack.c.bf16 %v612_v55, %v611_v54  ;;  %v1523_v58 = vld [vmem:[%s3154_s3 + $0xb8] sm:$0xff]  ;;  %v613_v60 = vld [vmem:[%s3154_s3 + $0x20] sm:$0xff]  ;;  %v614_v61 = vld [vmem:[%s3154_s3 + $0x28] sm:$0xff] }
  0x12   : > { %2177 = vmatprep.subr.bf16.mxu0 %v2439_v3  ;;  %2189 = vmatprep.subr.bf16.mxu1 %v2439_v3  ;;  %v2214_v59 = vpack.c.bf16 %v1523_v58, %v1522_v56  ;;  %v615_v62 = vld [vmem:[%s3154_s3 + $0x30] sm:$0xff]  ;;  %v2235_v63 = vpack.c.bf16 %v614_v61, %v613_v60  ;;  %v616_v0 = vld [vmem:[%s3154_s3 + $0x38] sm:$0xff]  ;;  %v1524_v1 = vld [vmem:[%s3154_s3 + $0xc0] sm:$0xff] }
  0x13   : > { %v1525_v2 = vld [vmem:[%s3154_s3 + $0xc8] sm:$0xff]  ;;  %v2238_v5 = vpack.c.bf16 %v616_v0, %v615_v62  ;;  %v617_v6 = vld [vmem:[%s3154_s3 + $0x40] sm:$0xff]  ;;  %v1526_v9 = vld [vmem:[%s3154_s3 + $0xd0] sm:$0xff] }
  0x14   : > { %v2217_v4 = vpack.c.bf16 %v1525_v2, %v1524_v1  ;;  %v618_v7 = vld [vmem:[%s3154_s3 + $0x48] sm:$0xff]  ;;  %v1527_v10 = vld [vmem:[%s3154_s3 + $0xd8] sm:$0xff]  ;;  %v1528_v13 = vld [vmem:[%s3154_s3 + $0xe0] sm:$0xff] }
  0x15   : > { %2179 = vmatpush3.bf16.msra.mxu0 %v2178_v25  ;;  %2191 = vmatpush3.bf16.msra.mxu1 %v2190_v26  ;;  %v2220_v11 = vpack.c.bf16 %v1527_v10, %v1526_v9  ;;  %v2241_v12 = vpack.c.bf16 %v618_v7, %v617_v6  ;;  %v1529_v14 = vld [vmem:[%s3154_s3 + $0xe8] sm:$0xff]  ;;  %v619_v16 = vld [vmem:[%s3154_s3 + $0x50] sm:$0xff]  ;;  %v620_v17 = vld [vmem:[%s3154_s3 + $0x58] sm:$0xff] }
  0x16   : > { %2192 = vmatprep.subr.bf16.mxu0 %v2439_v3  ;;  %2204 = vmatprep.subr.bf16.mxu1 %v2439_v3  ;;  %v2223_v15 = vpack.c.bf16 %v1529_v14, %v1528_v13  ;;  %v1530_v18 = vld [vmem:[%s3154_s3 + $0xf0] sm:$0xff]  ;;  %v2244_v19 = vpack.c.bf16 %v620_v17, %v619_v16  ;;  %v1531_v20 = vld [vmem:[%s3154_s3 + $0xf8] sm:$0xff]  ;;  %v621_v22 = vld [vmem:[%s3154_s3 + $0x60] sm:$0xff] }
  0x17   : > { %v2226_v21 = vpack.c.bf16 %v1531_v20, %v1530_v18  ;;  %v622_v23 = vld [vmem:[%s3154_s3 + $0x68] sm:$0xff]  ;;  %v623_v25 = vld [vmem:[%s3154_s3 + $0x70] sm:$0xff]  ;;  %v624_v26 = vld [vmem:[%s3154_s3 + $0x78] sm:$0xff] }
  0x18   : > { %v359_v31 = vld [vmem:[#allocation2 + $0x8] sm:$0xff]  ;;  %v2247_v24 = vpack.c.bf16 %v622_v23, %v621_v22  ;;  %v2250_v27 = vpack.c.bf16 %v624_v26, %v623_v25  ;;  %v1534_v41 = vld [vmem:[%s3154_s3 + $0x110] sm:$0xff]  ;;  %v1535_v42 = vld [vmem:[%s3154_s3 + $0x118] sm:$0xff] }
  0x19   : > { %v350_v33 = vld [vmem:[#allocation2 + $0x7] sm:$0xff]  ;;  %1813 = vmatmul.mubr.msk.f32.vlgmr.msra.gmra.mrb[0].mxu0 %vm348_vm1, %v359_v31  ;;  %v2256_v44 = vpack.c.bf16 %v1535_v42, %v1534_v41  ;;  %v1550_v49 = vld [vmem:[%s3155_s4 + $0x90] sm:$0xff]  ;;  %v1551_v51 = vld [vmem:[%s3155_s4 + $0x98] sm:$0xff] }
  0x1a   : > { %1832 = vmatmul.mubr.msk.f32.vlgmr.msra.gmra.mrb[0].mxu1 %vm348_vm1, %v350_v33  ;;  %2194 = vmatpush3.bf16.msra.mxu0 %v2193_v32  ;;  %v515_v46 = vld [vmem:[#allocation2 + $0x9] sm:$0xff]  ;;  %v1532_v33 = vld [vmem:[%s3154_s3 + $0x100] sm:$0xff]  ;;  %v1555_v2 = vld [vmem:[%s3155_s4 + $0xb8] sm:$0xff] }
  0x1b   : > { %2195 = vmatprep.subr.bf16.mxu0 %v2439_v3  ;;  %1850 = vmatprep.mubr.msk.f32.mxu0 %vm2441_vm0, %v2440_v8  ;;  %v1533_v34 = vld [vmem:[%s3154_s3 + $0x108] sm:$0xff]  ;;  %v1538_v52 = vld [vmem:[%s3154_s3 + $0x130] sm:$0xff]  ;;  %v2767_v54 = vld [vmem:[%s340_s13] sm:$0xff] }
  0x1c   : > { %2206 = vmatpush3.bf16.msra.mxu1 %v2205_v36  ;;  %1885 = vmatprep.mubr.msk.f32.mxu1 %vm2441_vm0, %v2440_v8  ;;  %v1515_v36 = vld [vmem:[%s3157_s6] ss:$0 sm:$0xff]  ;;  %v2253_v39 = vpack.c.bf16 %v1533_v34, %v1532_v33  ;;  %v1549_v45 = vld [vmem:[%s3155_s4 + $0x88] sm:$0xff]  ;;  %v1554_v0 = vld [vmem:[%s3155_s4 + $0xb0] sm:$0xff] }
  0x1d   : > { %2207 = vmatprep.subr.bf16.mxu1 %v2439_v3  ;;  %v1552_v58 = vld [vmem:[%s3155_s4 + $0xa0] sm:$0xff]  ;;  %v1553_v60 = vld [vmem:[%s3155_s4 + $0xa8] sm:$0xff]  ;;  %v2286_v6 = vpack.c.bf16 %v1555_v2, %v1554_v0  ;;  %v1558_v14 = vld [vmem:[%s3155_s4 + $0xd0] sm:$0xff] }
  0x1e   : > { %2197 = vmatpush3.bf16.msra.mxu0 %v2196_v37  ;;  %v1540_v61 = vld [vmem:[%s3154_s3 + $0x140] sm:$0xff]  ;;  %v1541_v62 = vld [vmem:[%s3154_s3 + $0x148] sm:$0xff]  ;;  %v1559_v16 = vld [vmem:[%s3155_s4 + $0xd8] sm:$0xff] }
  0x1f   : > { %2198 = vmatprep.subr.bf16.mxu0 %v2439_v3  ;;  %v2265_v1 = vpack.c.bf16 %v1541_v62, %v1540_v61  ;;  %v1556_v7 = vld [vmem:[%s3155_s4 + $0xc0] sm:$0xff]  ;;  %v1557_v10 = vld [vmem:[%s3155_s4 + $0xc8] sm:$0xff]  ;;  %v1546_v17 = vld [vmem:[%s3154_s3 + $0x170] sm:$0xff] }
  0x20   : > { %2209 = vmatpush3.bf16.msra.mxu1 %v2208_v50  ;;  %v2289_v13 = vpack.c.bf16 %v1557_v10, %v1556_v7  ;;  %v1547_v18 = vld [vmem:[%s3154_s3 + $0x178] sm:$0xff]  ;;  %v1560_v20 = vld [vmem:[%s3155_s4 + $0xe0] sm:$0xff]  ;;  %v1561_v22 = vld [vmem:[%s3155_s4 + $0xe8] sm:$0xff] }
  0x21   : > { %2210 = vmatprep.subr.bf16.mxu1 %v2439_v3  ;;  %v875_v23 = vld [vmem:[%s3155_s4] sm:$0xff]  ;;  %v2295_v25 = vpack.c.bf16 %v1561_v22, %v1560_v20  ;;  %v1562_v26 = vld [vmem:[%s3155_s4 + $0xf0] sm:$0xff]  ;;  %v1565_v34 = vld [vmem:[%s3155_s4 + $0x108] sm:$0xff] }
  0x22   : > { %2200 = vmatpush3.bf16.msra.mxu0 %v2199_v40  ;;  %v881_v41 = vld [vmem:[%s3155_s4 + $0x30] sm:$0xff]  ;;  %v882_v42 = vld [vmem:[%s3155_s4 + $0x38] sm:$0xff]  ;;  %v1577_v7 = vld [vmem:[%s3155_s4 + $0x168] sm:$0xff] }
  0x23   : > { %2201 = vmatprep.subr.bf16.mxu0 %v2439_v3  ;;  %v1574_v62 = vld [vmem:[%s3155_s4 + $0x150] sm:$0xff]  ;;  %v1575_v0 = vld [vmem:[%s3155_s4 + $0x158] sm:$0xff] }
  0x24   : > { %2212 = vmatpush3.bf16.msra.mxu1 %v2211_v53  ;;  %v1539_v53 = vld [vmem:[%s3154_s3 + $0x138] sm:$0xff]  ;;  %v1583_v20 = vld [vmem:[%s3156_s5 + $0x90] sm:$0xff] }
  0x25   : > { %2213 = vmatprep.subr.bf16.mxu1 %v2439_v3  ;;  %v890_v2 = vld [vmem:[%s3155_s4 + $0x78] sm:$0xff] }
  0x26   : > { %2203 = vmatpush3.bf16.msra.mxu0 %v2202_v43  ;;  %v1548_v43 = vld [vmem:[%s3155_s4 + $0x80] sm:$0xff] }
  0x27   : > { %2228 = vmatprep.subr.bf16.mxu0 %v2439_v3  ;;  %v2277_v48 = vpack.c.bf16 %v1549_v45, %v1548_v43  ;;  %v2310_v45 = vpack.c.bf16 %v882_v42, %v881_v41  ;;  %v1591_v42 = vld [vmem:[%s3156_s5 + $0xd0] sm:$0xff] }
  0x28   : > { %2215 = vmatpush3.bf16.msra.mxu1 %v2214_v59  ;;  %v2262_v59 = vpack.c.bf16 %v1539_v53, %v1538_v52  ;;  %v1571_v52 = vld [vmem:[%s3155_s4 + $0x138] sm:$0xff]  ;;  %v885_v53 = vld [vmem:[%s3155_s4 + $0x50] sm:$0xff] }
  0x29   : > { %1851 = vmatmul.mubr.msk.f32.vlgmr.msra.gmra.mrb[2].mxu0 %vm348_vm1, %v515_v46  ;;  %2216 = vmatprep.subr.bf16.mxu1 %v2439_v3  ;;  %v1536_v46 = vld [vmem:[%s3154_s3 + $0x120] sm:$0xff] }
  0x2a   : > { %2230 = vmatpush3.bf16.msra.mxu0 %v2229_v47  ;;  %1920 = vmatprep.mubr.msk.f32.mxu0 %vm2441_vm0, %v2440_v8  ;;  %v1537_v47 = vld [vmem:[%s3154_s3 + $0x128] sm:$0xff] }
  0x2b   : > { %2231 = vmatprep.subr.bf16.mxu0 %v2439_v3  ;;  %v2259_v50 = vpack.c.bf16 %v1537_v47, %v1536_v46  ;;  %v1569_v46 = vld [vmem:[%s3155_s4 + $0x128] sm:$0xff]  ;;  %v883_v47 = vld [vmem:[%s3155_s4 + $0x40] sm:$0xff] }
  0x2c   : > { %2218 = vmatpush3.bf16.msra.mxu1 %v2217_v4  ;;  %v1542_v4 = vld [vmem:[%s3154_s3 + $0x150] sm:$0xff] }
  0x2d   : > { %2219 = vmatprep.subr.bf16.mxu1 %v2439_v3 }
  0x2e   : > { %2233 = vmatpush3.bf16.msra.mxu0 %v2232_v57  ;;  %v2280_v57 = vpack.c.bf16 %v1551_v51, %v1550_v49 }
  0x2f   : > { %2234 = vmatprep.subr.bf16.mxu0 %v2439_v3 }
  0x30   : > { %2221 = vmatpush3.bf16.msra.mxu1 %v2220_v11  ;;  %v1544_v11 = vld [vmem:[%s3154_s3 + $0x160] sm:$0xff] }
  0x31   : > { %2222 = vmatprep.subr.bf16.mxu1 %v2439_v3 }
  0x32   : > { %2236 = vmatpush3.bf16.msra.mxu0 %v2235_v63  ;;  %v2283_v63 = vpack.c.bf16 %v1553_v60, %v1552_v58  ;;  %v1573_v58 = vld [vmem:[%s3155_s4 + $0x148] sm:$0xff] }
  0x33   : > { %2237 = vmatprep.subr.bf16.mxu0 %v2439_v3  ;;  %v888_v60 = vld [vmem:[%s3155_s4 + $0x68] sm:$0xff] }
  0x34   : > { %2224 = vmatpush3.bf16.msra.mxu1 %v2223_v15 }
  0x35   : > { %2225 = vmatprep.subr.bf16.mxu1 %v2439_v3 }
  0x36   : > { %2239 = vmatpush3.bf16.msra.mxu0 %v2238_v5  ;;  %v1543_v5 = vld [vmem:[%s3154_s3 + $0x158] sm:$0xff] }
  0x37   : > { %2240 = vmatprep.subr.bf16.mxu0 %v2439_v3  ;;  %v2268_v9 = vpack.c.bf16 %v1543_v5, %v1542_v4  ;;  %v2340_v4 = vpack.c.bf16 %v1575_v0, %v1574_v62 }
  0x38   : > { %2227 = vmatpush3.bf16.msra.mxu1 %v2226_v21  ;;  %v2274_v21 = vpack.c.bf16 %v1547_v18, %v1546_v17  ;;  %v1150_v17 = vld [vmem:[%s3156_s5] sm:$0xff] }
  0x39   : > { %2252 = vmatprep.subr.bf16.mxu1 %v2439_v3 }
  0x3a   : > { %2242 = vmatpush3.bf16.msra.mxu0 %v2241_v12  ;;  %v1545_v12 = vld [vmem:[%s3154_s3 + $0x168] sm:$0xff] }
  0x3b   : > { %2243 = vmatprep.subr.bf16.mxu0 %v2439_v3  ;;  %v2271_v15 = vpack.c.bf16 %v1545_v12, %v1544_v11  ;;  %v1578_v11 = vld [vmem:[%s3155_s4 + $0x170] sm:$0xff]  ;;  %v1579_v12 = vld [vmem:[%s3155_s4 + $0x178] sm:$0xff] }
  0x3e   : > { %2245 = vmatpush3.bf16.msra.mxu0 %v2244_v19  ;;  %v2292_v19 = vpack.c.bf16 %v1559_v16, %v1558_v14  ;;  %v1582_v16 = vld [vmem:[%s3156_s5 + $0x88] sm:$0xff] }
  0x3f   : > { %2246 = vmatprep.subr.bf16.mxu0 %v2439_v3 }
  0x42   : > { %2248 = vmatpush3.bf16.msra.mxu0 %v2247_v24  ;;  %v876_v24 = vld [vmem:[%s3155_s4 + $0x8] sm:$0xff] }
  0x43   : > { %2249 = vmatprep.subr.bf16.mxu0 %v2439_v3 }
  0x46   : > { %2251 = vmatpush3.bf16.msra.mxu0 %v2250_v27  ;;  %v2301_v27 = vpack.c.bf16 %v876_v24, %v875_v23  ;;  %v1152_v23 = vld [vmem:[%s3156_s5 + $0x10] sm:$0xff]  ;;  %v1153_v24 = vld [vmem:[%s3156_s5 + $0x18] sm:$0xff] }
  0x47   : > { %2276 = vmatprep.subr.bf16.mxu0 %v2439_v3 }
  0xec   : > { %v438_v28 = vpop.f32.mrb[0].mxu0 }
  0xed   : > { %v1814_v29 = vpop.f32.mrb[1].mxu0  ;;  %v511_v30 = vpop.f32.mrb[0].mxu1 }
  0xee   : > { %v512_v31 = vadd.f32 %v511_v30, %v438_v28  ;;  %v1833_v32 = vpop.f32.mrb[1].mxu1  ;;  %v1563_v28 = vld [vmem:[%s3155_s4 + $0xf8] sm:$0xff]  ;;  %v877_v29 = vld [vmem:[%s3155_s4 + $0x10] sm:$0xff] }
  0xef   : > { %v878_v30 = vld [vmem:[%s3155_s4 + $0x18] sm:$0xff]  ;;  %v1564_v32 = vld [vmem:[%s3155_s4 + $0x100] sm:$0xff] }
  0xf0   : > { %v2304_v33 = vpack.c.bf16 %v878_v30, %v877_v29  ;;  %v1154_v29 = vld [vmem:[%s3156_s5 + $0x20] sm:$0xff]  ;;  %v1155_v30 = vld [vmem:[%s3156_s5 + $0x28] sm:$0xff] }
  0xfc   : > { %v594_v35 = vpop.f32.mrb[2].mxu0 }
  0xfd   : > { %v598_v37 = vadd.f32 %v594_v35, %v512_v31  ;;  %v1852_v38 = vpop.f32.mrb[3].mxu0  ;;  %v2298_v31 = vpack.c.bf16 %v1563_v28, %v1562_v26  ;;  %v879_v35 = vld [vmem:[%s3155_s4 + $0x20] sm:$0xff]  ;;  %v2376_v26 = vpack.c.bf16 %v1153_v24, %v1152_v23  ;;  %v1586_v28 = vld [vmem:[%s3156_s5 + $0xa8] sm:$0xff]  ;;  %v1599_v24 = vld [vmem:[%s3156_s5 + $0x110] sm:$0xff] }
  0xfe   : > { %v1566_v38 = vld [vmem:[%s3155_s4 + $0x110] sm:$0xff] }
  0xff   : > { %v606_v40 = vadd.f32 %v1515_v36, %v598_v37  ;;  %v880_v36 = vld [vmem:[%s3155_s4 + $0x28] sm:$0xff]  ;;  %v2325_v37 = vpack.c.bf16 %v1565_v34, %v1564_v32  ;;  %v2379_v32 = vpack.c.bf16 %v1155_v30, %v1154_v29  ;;  %v1588_v34 = vld [vmem:[%s3156_s5 + $0xb8] sm:$0xff]  ;;  %v1603_v30 = vld [vmem:[%s3156_s5 + $0x130] sm:$0xff] }
 0x101   : > { %607 = vst [vmem:[#allocation2 + $0x8] sm:$0xff] %v606_v40  ;;  %1886 = vmatmul.mubr.f32.vlgmr.msra.gmra.mrb[2].mxu1 %v606_v40  ;;  %v1567_v40 = vld [vmem:[%s3155_s4 + $0x118] sm:$0xff] }
 0x102   : > { %2254 = vmatpush3.bf16.msra.mxu1 %v2253_v39  ;;  %1955 = vmatprep.mubr.msk.f32.mxu1 %vm2441_vm0, %v2440_v8  ;;  %v2307_v39 = vpack.c.bf16 %v880_v36, %v879_v35  ;;  %v2328_v43 = vpack.c.bf16 %v1567_v40, %v1566_v38  ;;  %v1589_v36 = vld [vmem:[%s3156_s5 + $0xc0] sm:$0xff]  ;;  %v1157_v40 = vld [vmem:[%s3156_s5 + $0x38] sm:$0xff] }
 0x103   : > { %2255 = vmatprep.subr.bf16.mxu1 %v2439_v3 }
 0x106   : > { %2257 = vmatpush3.bf16.msra.mxu1 %v2256_v44  ;;  %v1568_v44 = vld [vmem:[%s3155_s4 + $0x120] sm:$0xff] }
 0x107   : > { %2258 = vmatprep.subr.bf16.mxu1 %v2439_v3  ;;  %v2331_v49 = vpack.c.bf16 %v1569_v46, %v1568_v44  ;;  %v1594_v46 = vld [vmem:[%s3156_s5 + $0xe8] sm:$0xff] }
 0x108   : > { %v608_v55 = vld [vmem:[#allocation2 + $0x7] sm:$0xff] }
 0x109   : > { %v2769_v56 = vld [vmem:[#allocation2 + $0x9] sm:$0xff]  ;;  %1921 = vmatmul.mubr.f32.vlgmr.msra.gmra.mrb[4].mxu0 %v608_v55 }
 0x10a   : > { %873 = vst [vmem:[#allocation2 + $0x8] sm:$0xff] %v2767_v54  ;;  %2278 = vmatpush3.bf16.msra.mxu0 %v2277_v48  ;;  %2260 = vmatpush3.bf16.msra.mxu1 %v2259_v50  ;;  %v884_v48 = vld [vmem:[%s3155_s4 + $0x48] sm:$0xff]  ;;  %v1570_v50 = vld [vmem:[%s3155_s4 + $0x130] sm:$0xff] }
 0x10b   : > { %2279 = vmatprep.subr.bf16.mxu0 %v2439_v3  ;;  %2261 = vmatprep.subr.bf16.mxu1 %v2439_v3  ;;  %v2313_v51 = vpack.c.bf16 %v884_v48, %v883_v47  ;;  %v2334_v55 = vpack.c.bf16 %v1571_v52, %v1570_v50  ;;  %v1158_v47 = vld [vmem:[%s3156_s5 + $0x40] sm:$0xff]  ;;  %v1159_v48 = vld [vmem:[%s3156_s5 + $0x48] sm:$0xff]  ;;  %v1596_v52 = vld [vmem:[%s3156_s5 + $0xf8] sm:$0xff] }
 0x10c   : > { %1990 = vmatprep.mubr.msk.f32.mxu0 %vm2441_vm0, %v2440_v8  ;;  %v2385_v50 = vpack.c.bf16 %v1159_v48, %v1158_v47 }
 0x10e   : > { %2281 = vmatpush3.bf16.msra.mxu0 %v2280_v57  ;;  %2263 = vmatpush3.bf16.msra.mxu1 %v2262_v59  ;;  %v887_v59 = vld [vmem:[%s3155_s4 + $0x60] sm:$0xff] }
 0x10f   : > { %2282 = vmatprep.subr.bf16.mxu0 %v2439_v3  ;;  %2264 = vmatprep.subr.bf16.mxu1 %v2439_v3 }
 0x111   : > { %v874_v10 = vld [vmem:[#allocation2 + $0x7] sm:$0xff] }
 0x112   : > { %2284 = vmatpush3.bf16.msra.mxu0 %v2283_v63  ;;  %2266 = vmatpush3.bf16.msra.mxu1 %v2265_v1  ;;  %v2319_v63 = vpack.c.bf16 %v888_v60, %v887_v59  ;;  %v889_v1 = vld [vmem:[%s3155_s4 + $0x70] sm:$0xff] }
 0x113   : > { %2285 = vmatprep.subr.bf16.mxu0 %v2439_v3  ;;  %2267 = vmatprep.subr.bf16.mxu1 %v2439_v3  ;;  %v2322_v5 = vpack.c.bf16 %v890_v2, %v889_v1  ;;  %v1049_v14 = vld [vmem:[#allocation2 + $0x9] sm:$0xff] }
 0x114   : > { %v1164_v60 = vld [vmem:[%s3156_s5 + $0x70] sm:$0xff] }
 0x116   : > { %2287 = vmatpush3.bf16.msra.mxu0 %v2286_v6  ;;  %2269 = vmatpush3.bf16.msra.mxu1 %v2268_v9  ;;  %v1576_v6 = vld [vmem:[%s3155_s4 + $0x160] sm:$0xff] }
 0x117   : > { %2288 = vmatprep.subr.bf16.mxu0 %v2439_v3  ;;  %2270 = vmatprep.subr.bf16.mxu1 %v2439_v3  ;;  %v2343_v9 = vpack.c.bf16 %v1577_v7, %v1576_v6 }
 0x11a   : > { %2290 = vmatpush3.bf16.msra.mxu0 %v2289_v13  ;;  %2272 = vmatpush3.bf16.msra.mxu1 %v2271_v15  ;;  %v2346_v13 = vpack.c.bf16 %v1579_v12, %v1578_v11  ;;  %v1581_v15 = vld [vmem:[%s3156_s5 + $0x80] sm:$0xff] }
 0x11b   : > { %2291 = vmatprep.subr.bf16.mxu0 %v2439_v3  ;;  %2273 = vmatprep.subr.bf16.mxu1 %v2439_v3  ;;  %v2349_v18 = vpack.c.bf16 %v1582_v16, %v1581_v15 }
 0x11e   : > { %2293 = vmatpush3.bf16.msra.mxu0 %v2292_v19  ;;  %2275 = vmatpush3.bf16.msra.mxu1 %v2274_v21  ;;  %v1151_v19 = vld [vmem:[%s3156_s5 + $0x8] sm:$0xff]  ;;  %v1584_v21 = vld [vmem:[%s3156_s5 + $0x98] sm:$0xff] }
 0x11f   : > { %2294 = vmatprep.subr.bf16.mxu0 %v2439_v3  ;;  %2300 = vmatprep.subr.bf16.mxu1 %v2439_v3  ;;  %v2373_v22 = vpack.c.bf16 %v1151_v19, %v1150_v17  ;;  %v1580_v17 = vld [vmem:[%s3158_s7] ss:$0 sm:$0xff] }
 0x120   : > { %v1597_v19 = vld [vmem:[%s3156_s5 + $0x100] sm:$0xff] }
 0x121   : > { %1956 = vmatmul.mubr.f32.vlgmr.msra.gmra.mrb[4].mxu1 %v2769_v56  ;;  %v1572_v56 = vld [vmem:[%s3155_s4 + $0x140] sm:$0xff] }
 0x122   : > { %2296 = vmatpush3.bf16.msra.mxu0 %v2295_v25  ;;  %2302 = vmatpush3.bf16.msra.mxu1 %v2301_v27  ;;  %v2337_v61 = vpack.c.bf16 %v1573_v58, %v1572_v56  ;;  %v2352_v25 = vpack.c.bf16 %v1584_v21, %v1583_v20  ;;  %v1585_v27 = vld [vmem:[%s3156_s5 + $0xa0] sm:$0xff]  ;;  %v1163_v58 = vld [vmem:[%s3156_s5 + $0x68] sm:$0xff] }
 0x123   : > { %2297 = vmatprep.subr.bf16.mxu0 %v2439_v3  ;;  %2303 = vmatprep.subr.bf16.mxu1 %v2439_v3  ;;  %v1598_v20 = vld [vmem:[%s3156_s5 + $0x108] sm:$0xff] }
 0x124   : > { %2025 = vmatprep.mubr.msk.f32.mxu1 %vm2441_vm0, %v2440_v8 }
 0x126   : > { %2299 = vmatpush3.bf16.msra.mxu0 %v2298_v31  ;;  %2305 = vmatpush3.bf16.msra.mxu1 %v2304_v33  ;;  %v2355_v31 = vpack.c.bf16 %v1586_v28, %v1585_v27  ;;  %v1587_v33 = vld [vmem:[%s3156_s5 + $0xb0] sm:$0xff]  ;;  %v1601_v27 = vld [vmem:[%s3156_s5 + $0x120] sm:$0xff]  ;;  %v1602_v28 = vld [vmem:[%s3156_s5 + $0x128] sm:$0xff] }
 0x127   : > { %2324 = vmatprep.subr.bf16.mxu0 %v2439_v3  ;;  %2306 = vmatprep.subr.bf16.mxu1 %v2439_v3  ;;  %v2358_v35 = vpack.c.bf16 %v1588_v34, %v1587_v33  ;;  %v2403_v29 = vpack.c.bf16 %v1602_v28, %v1601_v27  ;;  %v1605_v33 = vld [vmem:[%s3156_s5 + $0x140] sm:$0xff]  ;;  %v1606_v34 = vld [vmem:[%s3156_s5 + $0x148] sm:$0xff] }
 0x129   : > { %1991 = vmatmul.mubr.f32.vlgmr.msra.gmra.mrb[6].mxu0 %v2767_v54  ;;  %v886_v54 = vld [vmem:[%s3155_s4 + $0x58] sm:$0xff] }
 0x12a   : > { %2326 = vmatpush3.bf16.msra.mxu0 %v2325_v37  ;;  %2308 = vmatpush3.bf16.msra.mxu1 %v2307_v39  ;;  %v2316_v57 = vpack.c.bf16 %v886_v54, %v885_v53  ;;  %v1590_v37 = vld [vmem:[%s3156_s5 + $0xc8] sm:$0xff]  ;;  %v1156_v39 = vld [vmem:[%s3156_s5 + $0x30] sm:$0xff]  ;;  %v1161_v54 = vld [vmem:[%s3156_s5 + $0x58] sm:$0xff] }
 0x12b   : > { %2327 = vmatprep.subr.bf16.mxu0 %v2439_v3  ;;  %2309 = vmatprep.subr.bf16.mxu1 %v2439_v3  ;;  %v2361_v38 = vpack.c.bf16 %v1590_v37, %v1589_v36  ;;  %v2382_v41 = vpack.c.bf16 %v1157_v40, %v1156_v39  ;;  %v1160_v53 = vld [vmem:[%s3156_s5 + $0x50] sm:$0xff]  ;;  %v1608_v37 = vld [vmem:[%s3156_s5 + $0x158] sm:$0xff]  ;;  %v1609_v39 = vld [vmem:[%s3156_s5 + $0x160] sm:$0xff] }
 0x12c   : > { %2060 = vmatprep.mubr.msk.f32.mxu0 %vm2441_vm0, %v2440_v8  ;;  %v2388_v56 = vpack.c.bf16 %v1161_v54, %v1160_v53  ;;  %v1607_v36 = vld [vmem:[%s3156_s5 + $0x150] sm:$0xff]  ;;  %v1610_v40 = vld [vmem:[%s3156_s5 + $0x168] sm:$0xff] }
 0x12e   : > { %2329 = vmatpush3.bf16.msra.mxu0 %v2328_v43  ;;  %2311 = vmatpush3.bf16.msra.mxu1 %v2310_v45  ;;  %v1592_v43 = vld [vmem:[%s3156_s5 + $0xd8] sm:$0xff]  ;;  %v1593_v45 = vld [vmem:[%s3156_s5 + $0xe0] sm:$0xff] }
 0x12f   : > { %2330 = vmatprep.subr.bf16.mxu0 %v2439_v3  ;;  %2312 = vmatprep.subr.bf16.mxu1 %v2439_v3  ;;  %v2364_v44 = vpack.c.bf16 %v1592_v43, %v1591_v42  ;;  %v1611_v42 = vld [vmem:[%s3156_s5 + $0x170] sm:$0xff]  ;;  %v1612_v43 = vld [vmem:[%s3156_s5 + $0x178] sm:$0xff] }
 0x132   : > { %2332 = vmatpush3.bf16.msra.mxu0 %v2331_v49  ;;  %2314 = vmatpush3.bf16.msra.mxu1 %v2313_v51  ;;  %v2367_v49 = vpack.c.bf16 %v1594_v46, %v1593_v45  ;;  %v1595_v51 = vld [vmem:[%s3156_s5 + $0xf0] sm:$0xff] }
 0x133   : > { %2333 = vmatprep.subr.bf16.mxu0 %v2439_v3  ;;  %2315 = vmatprep.subr.bf16.mxu1 %v2439_v3 }
 0x136   : > { %2335 = vmatpush3.bf16.msra.mxu0 %v2334_v55  ;;  %2317 = vmatpush3.bf16.msra.mxu1 %v2316_v57  ;;  %v2370_v55 = vpack.c.bf16 %v1596_v52, %v1595_v51  ;;  %v1162_v57 = vld [vmem:[%s3156_s5 + $0x60] sm:$0xff] }
 0x137   : > { %2336 = vmatprep.subr.bf16.mxu0 %v2439_v3  ;;  %2318 = vmatprep.subr.bf16.mxu1 %v2439_v3  ;;  %v2391_v59 = vpack.c.bf16 %v1163_v58, %v1162_v57  ;;  %v1613_v52 = vld [vmem:[%s3159_s8] ss:$0 sm:$0xff] }
 0x13a   : > { %2338 = vmatpush3.bf16.msra.mxu0 %v2337_v61  ;;  %2320 = vmatpush3.bf16.msra.mxu1 %v2319_v63  ;;  %v1165_v61 = vld [vmem:[%s3156_s5 + $0x78] sm:$0xff] }
 0x13b   : > { %2339 = vmatprep.subr.bf16.mxu0 %v2439_v3  ;;  %2321 = vmatprep.subr.bf16.mxu1 %v2439_v3  ;;  %v2394_v62 = vpack.c.bf16 %v1165_v61, %v1164_v60 }
 0x13e   : > { %2341 = vmatpush3.bf16.msra.mxu0 %v2340_v4  ;;  %2323 = vmatpush3.bf16.msra.mxu1 %v2322_v5 }
 0x13f   : > { %2342 = vmatprep.subr.bf16.mxu0 %v2439_v3  ;;  %2348 = vmatprep.subr.bf16.mxu1 %v2439_v3 }
 0x141   : > { %2026 = vmatmul.mubr.f32.vlgmr.msra.gmra.mrb[6].mxu1 %v874_v10 }
 0x142   : > { %2344 = vmatpush3.bf16.msra.mxu0 %v2343_v9  ;;  %2095 = vmatprep.mubr.msk.f32.mxu1 %vm2441_vm0, %v2440_v8 }
 0x143   : > { %2345 = vmatprep.subr.bf16.mxu0 %v2439_v3  ;;  %2350 = vmatpush3.bf16.msra.mxu1 %v2349_v18 }
 0x144   : > { %2351 = vmatprep.subr.bf16.mxu1 %v2439_v3 }
 0x146   : > { %2347 = vmatpush3.bf16.msra.mxu0 %v2346_v13 }
 0x147   : > { %2372 = vmatprep.subr.bf16.mxu0 %v2439_v3  ;;  %2353 = vmatpush3.bf16.msra.mxu1 %v2352_v25  ;;  %v1600_v25 = vld [vmem:[%s3156_s5 + $0x118] sm:$0xff] }
 0x148   : > { %2354 = vmatprep.subr.bf16.mxu1 %v2439_v3 }
 0x149   : > { %2061 = vmatmul.mubr.f32.vlgmr.msra.gmra.mrb[8].mxu0 %v1049_v14 }
 0x14a   : > { %2130 = vmatprep.mubr.msk.f32.mxu0 %vm2441_vm0, %v2440_v8  ;;  %2374 = vmatpush3.bf16.msra.mxu0 %v2373_v22  ;;  %v2397_v22 = vpack.c.bf16 %v1598_v20, %v1597_v19 }
 0x14b   : > { %2375 = vmatprep.subr.bf16.mxu0 %v2439_v3  ;;  %2356 = vmatpush3.bf16.msra.mxu1 %v2355_v31 }
 0x14c   : > { %2357 = vmatprep.subr.bf16.mxu1 %v2439_v3 }
 0x14e   : > { %2377 = vmatpush3.bf16.msra.mxu0 %v2376_v26  ;;  %v2400_v26 = vpack.c.bf16 %v1600_v25, %v1599_v24 }
 0x14f   : > { %2378 = vmatprep.subr.bf16.mxu0 %v2439_v3  ;;  %2359 = vmatpush3.bf16.msra.mxu1 %v2358_v35  ;;  %v2409_v35 = vpack.c.bf16 %v1606_v34, %v1605_v33 }
 0x150   : > { %2360 = vmatprep.subr.bf16.mxu1 %v2439_v3 }
 0x152   : > { %2380 = vmatpush3.bf16.msra.mxu0 %v2379_v32 }
 0x153   : > { %2381 = vmatprep.subr.bf16.mxu0 %v2439_v3  ;;  %2362 = vmatpush3.bf16.msra.mxu1 %v2361_v38  ;;  %v2412_v38 = vpack.c.bf16 %v1608_v37, %v1607_v36 }
 0x154   : > { %2363 = vmatprep.subr.bf16.mxu1 %v2439_v3 }
 0x156   : > { %2383 = vmatpush3.bf16.msra.mxu0 %v2382_v41  ;;  %v2415_v41 = vpack.c.bf16 %v1610_v40, %v1609_v39 }
 0x157   : > { %2384 = vmatprep.subr.bf16.mxu0 %v2439_v3  ;;  %2365 = vmatpush3.bf16.msra.mxu1 %v2364_v44  ;;  %v2418_v44 = vpack.c.bf16 %v1612_v43, %v1611_v42 }
 0x158   : > { %2366 = vmatprep.subr.bf16.mxu1 %v2439_v3 }
 0x15a   : > { %2386 = vmatpush3.bf16.msra.mxu0 %v2385_v50 }
 0x15b   : > { %2368 = vmatpush3.bf16.msra.mxu1 %v2367_v49  ;;  %2387 = vmatprep.subr.bf16.mxu0 %v2439_v3 }
 0x15c   : > { %2369 = vmatprep.subr.bf16.mxu1 %v2439_v3 }
 0x15e   : > { %2389 = vmatpush3.bf16.msra.mxu0 %v2388_v56 }
 0x15f   : > { %2371 = vmatpush3.bf16.msra.mxu1 %v2370_v55  ;;  %2390 = vmatprep.subr.bf16.mxu0 %v2439_v3 }
 0x160   : > { %2396 = vmatprep.subr.bf16.mxu1 %v2439_v3 }
 0x162   : > { %2392 = vmatpush3.bf16.msra.mxu0 %v2391_v59 }
 0x163   : > { %2393 = vmatprep.subr.bf16.mxu0 %v2439_v3 }
 0x166   : > { %2395 = vmatpush3.bf16.msra.mxu0 %v2394_v62 }
 0x1d4   : > { %v709_v63 = vpop.f32.mrb[2].mxu1 }
 0x1d5   : > { %v1887_v0 = vpop.f32.mrb[3].mxu1 }
 0x1dc   : > { %v779_v1 = vpop.f32.mrb[4].mxu0 }
 0x1dd   : > { %v780_v2 = vadd.f32 %v779_v1, %v709_v63  ;;  %v1922_v4 = vpop.f32.mrb[5].mxu0 }
 0x1f4   : > { %v867_v5 = vpop.f32.mrb[4].mxu1 }
 0x1f5   : > { %v871_v6 = vadd.f32 %v867_v5, %v780_v2  ;;  %v1957_v7 = vpop.f32.mrb[5].mxu1 }
 0x1fc   : > { %v975_v9 = vpop.f32.mrb[6].mxu0 }
 0x1fd   : > { %v1992_v10 = vpop.f32.mrb[7].mxu0 }
 0x214   : > { %v1045_v11 = vpop.f32.mrb[6].mxu1 }
 0x215   : > { %v1046_v12 = vadd.f32 %v1045_v11, %v975_v9  ;;  %v2027_v13 = vpop.f32.mrb[7].mxu1 }
 0x21c   : > { %v1133_v14 = vpop.f32.mrb[8].mxu0 }
 0x21d   : > { %v1137_v15 = vadd.f32 %v1133_v14, %v1046_v12  ;;  %v2062_v16 = vpop.f32.mrb[9].mxu0 }
 0x21f   : > { %v1138_v18 = vadd.f32 %v1137_v15, %v871_v6 }
 0x221   : > { %v1146_v21 = vadd.f32 %v1580_v17, %v1138_v18 }
 0x223   : > { %v1147_v23 = vmax.f32 %v1146_v21, 0.0 }
 0x225   : > { %1148 = vst [vmem:[#allocation2 + $0x8] sm:$0xff] %v1147_v23  ;;  %2096 = vmatmul.mubr.f32.vlgmr.msra.gmra.mrb[8].mxu1 %v1147_v23 }
 0x226   : > { %2398 = vmatpush3.bf16.msra.mxu1 %v2397_v22  ;;  %2165 = vmatprep.mubr.msk.f32.mxu1 %vm2441_vm0, %v2440_v8  ;;  %v1604_v8 = vld [vmem:[%s3156_s5 + $0x138] sm:$0xff] }
 0x227   : > { %2399 = vmatprep.subr.bf16.mxu1 %v2439_v3  ;;  %v2406_v32 = vpack.c.bf16 %v1604_v8, %v1603_v30 }
 0x22a   : > { %2401 = vmatpush3.bf16.msra.mxu1 %v2400_v26 }
 0x22b   : > { %2402 = vmatprep.subr.bf16.mxu1 %v2439_v3 }
 0x22c   : > { %v1149_v31 = vld [vmem:[#allocation2 + $0x7] sm:$0xff] }
 0x22d   : > { %2131 = vmatmul.mubr.f32.vlgmr.msra.gmra.mrb[10].mxu0 %v1149_v31  ;;  %v1324_v45 = vld [vmem:[#allocation2 + $0x9] sm:$0xff] }
 0x22e   : > { %2404 = vmatpush3.bf16.msra.mxu1 %v2403_v29 }
 0x22f   : > { %2405 = vmatprep.subr.bf16.mxu1 %v2439_v3 }
 0x232   : > { %2407 = vmatpush3.bf16.msra.mxu1 %v2406_v32 }
 0x233   : > { %2408 = vmatprep.subr.bf16.mxu1 %v2439_v3 }
 0x236   : > { %2410 = vmatpush3.bf16.msra.mxu1 %v2409_v35 }
 0x237   : > { %2411 = vmatprep.subr.bf16.mxu1 %v2439_v3 }
 0x23a   : > { %2413 = vmatpush3.bf16.msra.mxu1 %v2412_v38 }
 0x23b   : > { %2414 = vmatprep.subr.bf16.mxu1 %v2439_v3 }
 0x23e   : > { %2416 = vmatpush3.bf16.msra.mxu1 %v2415_v41 }
 0x23f   : > { %2417 = vmatprep.subr.bf16.mxu1 %v2439_v3 }
 0x242   : > { %2419 = vmatpush3.bf16.msra.mxu1 %v2418_v44 }
 0x245   : > { %2166 = vmatmul.mubr.f32.vlgmr.msra.gmra.mrb[10].mxu1 %v1324_v45 }
 0x2f8   : > { %v1250_v46 = vpop.f32.mrb[8].mxu1 }
 0x2f9   : > { %v2097_v47 = vpop.f32.mrb[9].mxu1 }
 0x300   : > { %v1320_v48 = vpop.f32.mrb[10].mxu0 }
 0x301   : > { %v1321_v49 = vadd.f32 %v1320_v48, %v1250_v46  ;;  %v2132_v50 = vpop.f32.mrb[11].mxu0 }
 0x318   : > { %v1408_v51 = vpop.f32.mrb[10].mxu1 }
 0x319   : > { %v1412_v53 = vadd.f32 %v1408_v51, %v1321_v49  ;;  %v2167_v54 = vpop.f32.mrb[11].mxu1 }
 0x31b   : > { %v1420_v55 = vadd.f32 %v1613_v52, %v1412_v53 }
 0x31d   : > { %v1421_v3 = vmax.f32 %v1420_v55, 0.0 }
 0x31f   : > { %1422 = vst [vmem:[%s344_s20] sm:$0xff] %v1421_v3 }
 0x320 PF: > { %s19_s30 = sadd.s32 1, %s2437_s30  }
 0x321   : > { %p16_p4 = scmp.ge.s32.totalorder %s19_s30, 4  }
 0x323   :  { %18 = sbr.rel (!%p16_p4) target bundleno = 1 (0x1), region = 97 }

</bundles_post_ra>
